<compile_context>
chip_gen: v7x
topology: tpu7x:2x2x1
jax: 0.10.0
libtpu: 0.0.40
codegen_flags: <defaults>
</compile_context>

<pallas_src>
import functools
import numpy as np

import jax
import jax.numpy as jnp
from jax import lax
from jax.experimental import pallas as pl
from jax.experimental.pallas import tpu as pltpu


# ----------------------------- in-kernel helpers -----------------------------

def _layernorm(x, g, b, eps=1e-5):
    mu = jnp.mean(x, axis=-1, keepdims=True)
    xc = x - mu
    var = jnp.mean(xc * xc, axis=-1, keepdims=True)
    return xc * lax.rsqrt(var + eps) * g + b


def _gelu_tanh(x):
    # tanh-approx GELU (jax.nn.gelu approximate=True); tanh runs on the EUP.
    # Differs from PyTorch's exact-erf nn.GELU() at ~1e-3 (per perf review).
    c0 = 0.7978845608028654  # sqrt(2/pi)
    return 0.5 * x * (1.0 + jnp.tanh(c0 * (x + 0.044715 * (x * x * x))))


# --------------------------- fused encoder-stack kernel ----------------------

def encoder_stack_kernel(x_ref, keepc_ref, keepr_ref,
                         ln1g_ref, ln1b_ref, wqkv_ref, bqkv_ref, wp_ref, bp_ref,
                         ln2g_ref, ln2b_ref, w1_ref, b1_ref, w2_ref, b2_ref,
                         o_ref, *, n_head):
    layer = pl.program_id(1)

    # Layer 0: seed the VMEM-resident activation accumulator from the input.
    @pl.when(layer == 0)
    def _():
        o_ref[...] = x_ref[...].astype(o_ref.dtype)

    x = o_ref[...].astype(jnp.float32)              # (bt, T, C), VMEM resident
    bt, T, C = x.shape
    hs = C // n_head
    scale = 1.0 / float(np.sqrt(hs))
    bf16 = jnp.bfloat16
    f32 = jnp.float32

    # mask[b, i, j] = keep[b, i] * keep[b, j]; 0.0 => masked (built in-kernel
    # from O(B*T) vectors, no (B, T, T) HBM traffic).
    mask = keepc_ref[...] * keepr_ref[...]          # (bt, T, T)
    # head-major tiling so batch index g = h * bt + b
    mask = jnp.concatenate([mask] * n_head, axis=0)  # (n_head*bt, T, T)

    # ---- attention branch on ln1(x): fused QKV matmul (bf16 -> f32 acc) ----
    h = _layernorm(x, ln1g_ref[0], ln1b_ref[0]).reshape(bt * T, C)
    qkv = jnp.dot(h.astype(bf16), wqkv_ref[0],
                  preferred_element_type=f32) + bqkv_ref[0]   # (bt*T, 3C)

    def to_heads(z):                                # (bt*T, C) -> (n_head*bt, T, hs)
        parts = [z[:, hh * hs:(hh + 1) * hs] for hh in range(n_head)]
        return jnp.concatenate(parts, axis=0).reshape(n_head * bt, T, hs)

    q = to_heads(qkv[:, 0 * C:1 * C])
    k = to_heads(qkv[:, 1 * C:2 * C])
    v = to_heads(qkv[:, 2 * C:3 * C])

    # Single batched contraction over all (head, batch) pairs.
    att = jnp.einsum('gqd,gkd->gqk', q.astype(bf16), k.astype(bf16),
                     preferred_element_type=f32) * scale       # (n_head*bt, T, T)
    att = jnp.where(mask == 0.0, -1e9, att)
    att = att - jnp.max(att, axis=-1, keepdims=True)
    e = jnp.exp(att)
    p = e * pl.reciprocal(jnp.sum(e, axis=-1, keepdims=True), approx=True)

    y = jnp.einsum('gqk,gkd->gqd', p.astype(bf16), v.astype(bf16),
                   preferred_element_type=f32)                 # (n_head*bt, T, hs)
    y = y.reshape(n_head, bt * T, hs)
    y = jnp.concatenate([y[hh] for hh in range(n_head)], axis=-1)   # (bt*T, C)

    attn_out = jnp.dot(y.astype(bf16), wp_ref[0],
                       preferred_element_type=f32) + bp_ref[0]

    # ---- MLP branch on ln2(x) ----
    h2 = _layernorm(x, ln2g_ref[0], ln2b_ref[0]).reshape(bt * T, C)
    m = jnp.dot(h2.astype(bf16), w1_ref[0],
                preferred_element_type=f32) + b1_ref[0]
    m = _gelu_tanh(m)
    m = jnp.dot(m.astype(bf16), w2_ref[0],
                preferred_element_type=f32) + b2_ref[0]

    # residual update of the VMEM-resident activations
    o_ref[...] = (x + attn_out.reshape(bt, T, C)
                    + m.reshape(bt, T, C)).astype(o_ref.dtype)


WEIGHT_KEYS = ('ln1_g', 'ln1_b', 'wqkv', 'bqkv', 'wp', 'bp',
               'ln2_g', 'ln2_b', 'w1', 'b1', 'w2', 'b2')


def transformer_pattern_encoder(x, x_padding_judge, params, *, n_head,
                                batch_tile=None, interpret=False):
    """x: (B, T, C) float32; x_padding_judge: (B, T), 1.0 => padded token."""
    B, T, C = x.shape
    L = params['wqkv'].shape[0]
    bt = B if batch_tile is None else batch_tile
    assert B % bt == 0

    keep = (1.0 - x_padding_judge).astype(jnp.float32)   # (B, T), 0.0 => padded
    keep_col = keep[:, :, None]                           # (B, T, 1)
    keep_row = keep[:, None, :]                           # (B, 1, T)

    weights = [params[k] for k in WEIGHT_KEYS]

    act_spec = pl.BlockSpec((bt, T, C), lambda b, l: (b, 0, 0))
    in_specs = [act_spec,
                pl.BlockSpec((bt, T, 1), lambda b, l: (b, 0, 0)),
                pl.BlockSpec((bt, 1, T), lambda b, l: (b, 0, 0))]
    # stacked per-layer weights: index_map picks layer l (double-buffered, so
    # the next layer's weights prefetch while the current layer computes)
    in_specs += [pl.BlockSpec((1,) + w.shape[1:], lambda b, l: (l, 0, 0))
                 for w in weights]

    return pl.pallas_call(
        functools.partial(encoder_stack_kernel, n_head=n_head),
        out_shape=jax.ShapeDtypeStruct((B, T, C), jnp.float32),
        grid=(B // bt, L),
        in_specs=in_specs,
        out_specs=act_spec,
        compiler_params=pltpu.CompilerParams(
            dimension_semantics=("parallel", "arbitrary"),
            vmem_limit_bytes=64 * 1024 * 1024),
        interpret=interpret,
    )(x, keep_col, keep_row, *weights)


# ----------------------------- params ----------------------------------------

def init_params(key, n_embd, n_head, n_layer):
    C, L = n_embd, n_layer
    std = 0.02
    ks = jax.random.split(key, 4)

    def w(k, shape):   # matmul weights stored bf16 (MXU operands, half the DMA)
        return (std * jax.random.normal(k, shape, jnp.float32)).astype(jnp.bfloat16)

    return dict(
        ln1_g=jnp.ones((L, 1, C), jnp.float32),
        ln1_b=jnp.zeros((L, 1, C), jnp.float32),
        wqkv=w(ks[0], (L, C, 3 * C)),               # fused query/key/value
        bqkv=jnp.zeros((L, 1, 3 * C), jnp.float32),
        wp=w(ks[1], (L, C, C)),
        bp=jnp.zeros((L, 1, C), jnp.float32),
        ln2_g=jnp.ones((L, 1, C), jnp.float32),
        ln2_b=jnp.zeros((L, 1, C), jnp.float32),
        w1=w(ks[2], (L, C, 4 * C)),
        b1=jnp.zeros((L, 1, 4 * C), jnp.float32),
        w2=w(ks[3], (L, 4 * C, C)),
        b2=jnp.zeros((L, 1, C), jnp.float32),
    )


# ----------------------------- main -------------------------------------------

if __name__ == "__main__":
    key = jax.random.PRNGKey(0)
    k_param, k_x = jax.random.split(key)

    B, T, C, NH, NL = 2, 8, 32, 4, 2
    params = init_params(k_param, C, NH, NL)

    x = jax.random.normal(k_x, (B, T, C), jnp.float32)
    # last two positions of each sequence are padding (x_padding_judge == 1.0)
    x_padding_judge = jnp.zeros((B, T), jnp.float32).at[:, 6:].set(1.0)

    fwd = jax.jit(functools.partial(transformer_pattern_encoder,
                                    params=params, n_head=NH))
    out = fwd(x, x_padding_judge)
    jax.block_until_ready(out)
    assert out.shape == (B, T, C)
    print("KERNEL_OK")
</pallas_src>

<mosaic_0001>
module attributes {stable_mosaic.version = 11 : i64} {
  func.func @encoder_stack_kernel(%arg0: i32, %arg1: i32, %arg2: memref<2x8x32xf32, #tpu.memory_space<vmem>>, %arg3: memref<2x8x1xf32, #tpu.memory_space<vmem>>, %arg4: memref<2x1x8xf32, #tpu.memory_space<vmem>>, %arg5: memref<1x1x32xf32, #tpu.memory_space<vmem>>, %arg6: memref<1x1x32xf32, #tpu.memory_space<vmem>>, %arg7: memref<1x32x96xbf16, #tpu.memory_space<vmem>>, %arg8: memref<1x1x96xf32, #tpu.memory_space<vmem>>, %arg9: memref<1x32x32xbf16, #tpu.memory_space<vmem>>, %arg10: memref<1x1x32xf32, #tpu.memory_space<vmem>>, %arg11: memref<1x1x32xf32, #tpu.memory_space<vmem>>, %arg12: memref<1x1x32xf32, #tpu.memory_space<vmem>>, %arg13: memref<1x32x128xbf16, #tpu.memory_space<vmem>>, %arg14: memref<1x1x128xf32, #tpu.memory_space<vmem>>, %arg15: memref<1x128x32xbf16, #tpu.memory_space<vmem>>, %arg16: memref<1x1x32xf32, #tpu.memory_space<vmem>>, %arg17: memref<2x8x32xf32, #tpu.memory_space<vmem>>) attributes {dimension_semantics = [#tpu.dimension_semantics<parallel>, #tpu.dimension_semantics<arbitrary>], iteration_bounds = array<i64: 1, 2>, scalar_prefetch = 0 : i64, scratch_operands = 0 : i64, tpu.core_type = #tpu.core_type<tc>, window_params = [{transform_indices = @transform_0, window_bounds = array<i64: 2, 8, 32>}, {transform_indices = @transform_1, window_bounds = array<i64: 2, 8, 1>}, {transform_indices = @transform_2, window_bounds = array<i64: 2, 1, 8>}, {transform_indices = @transform_3, window_bounds = array<i64: 1, 1, 32>}, {transform_indices = @transform_4, window_bounds = array<i64: 1, 1, 32>}, {transform_indices = @transform_5, window_bounds = array<i64: 1, 32, 96>}, {transform_indices = @transform_6, window_bounds = array<i64: 1, 1, 96>}, {transform_indices = @transform_7, window_bounds = array<i64: 1, 32, 32>}, {transform_indices = @transform_8, window_bounds = array<i64: 1, 1, 32>}, {transform_indices = @transform_9, window_bounds = array<i64: 1, 1, 32>}, {transform_indices = @transform_10, window_bounds = array<i64: 1, 1, 32>}, {transform_indices = @transform_11, window_bounds = array<i64: 1, 32, 128>}, {transform_indices = @transform_12, window_bounds = array<i64: 1, 1, 128>}, {transform_indices = @transform_13, window_bounds = array<i64: 1, 128, 32>}, {transform_indices = @transform_14, window_bounds = array<i64: 1, 1, 32>}, {transform_indices = @transform_15, window_bounds = array<i64: 2, 8, 32>}]} {
    %c0_i32 = arith.constant 0 : i32
    %0 = arith.cmpi eq, %arg1, %c0_i32 : i32
    %1 = arith.extui %0 : i1 to i32
    %c0_i32_0 = arith.constant 0 : i32
    %2 = arith.cmpi ne, %1, %c0_i32_0 : i32
    scf.if %2 {
      %c0_72 = arith.constant 0 : index
      %c0_73 = arith.constant 0 : index
      %c0_74 = arith.constant 0 : index
      %167 = vector.load %arg2[%c0_72, %c0_73, %c0_74] : memref<2x8x32xf32, #tpu.memory_space<vmem>>, vector<2x8x32xf32>
      %c0_75 = arith.constant 0 : index
      %c0_76 = arith.constant 0 : index
      %c0_77 = arith.constant 0 : index
      %168 = vector.load %arg17[%c0_75, %c0_76, %c0_77] : memref<2x8x32xf32, #tpu.memory_space<vmem>>, vector<2x8x32xf32>
      tpu.vector_store %arg17[%c0_75, %c0_76, %c0_77], %167 {strides = array<i32>} : memref<2x8x32xf32, #tpu.memory_space<vmem>>, vector<2x8x32xf32>,
    } else {
    }
    %c0 = arith.constant 0 : index
    %c0_1 = arith.constant 0 : index
    %c0_2 = arith.constant 0 : index
    %3 = vector.load %arg17[%c0, %c0_1, %c0_2] : memref<2x8x32xf32, #tpu.memory_space<vmem>>, vector<2x8x32xf32>
    %c0_3 = arith.constant 0 : index
    %c0_4 = arith.constant 0 : index
    %c0_5 = arith.constant 0 : index
    %4 = vector.load %arg3[%c0_3, %c0_4, %c0_5] : memref<2x8x1xf32, #tpu.memory_space<vmem>>, vector<2x8x1xf32>
    %c0_6 = arith.constant 0 : index
    %c0_7 = arith.constant 0 : index
    %c0_8 = arith.constant 0 : index
    %5 = vector.load %arg4[%c0_6, %c0_7, %c0_8] : memref<2x1x8xf32, #tpu.memory_space<vmem>>, vector<2x1x8xf32>
    %6 = vector.broadcast %4 : vector<2x8x1xf32> to vector<2x8x8xf32>
    %7 = vector.broadcast %5 : vector<2x1x8xf32> to vector<2x8x8xf32>
    %8 = arith.mulf %6, %7 : vector<2x8x8xf32>
    %9 = tpu.concatenate %8, %8, %8, %8 in 0 : vector<2x8x8xf32>, vector<2x8x8xf32>, vector<2x8x8xf32>, vector<2x8x8xf32> -> vector<8x8x8xf32>
    %c0_9 = arith.constant 0 : index
    %c0_10 = arith.constant 0 : index
    %c0_11 = arith.constant 0 : index
    %10 = vector.load %arg5[%c0_9, %c0_10, %c0_11] : memref<1x1x32xf32, #tpu.memory_space<vmem>>, vector<1x1x32xf32>
    %11 = vector.shape_cast %10 : vector<1x1x32xf32> to vector<1x32xf32>
    %c0_12 = arith.constant 0 : index
    %c0_13 = arith.constant 0 : index
    %c0_14 = arith.constant 0 : index
    %12 = vector.load %arg6[%c0_12, %c0_13, %c0_14] : memref<1x1x32xf32, #tpu.memory_space<vmem>>, vector<1x1x32xf32>
    %13 = vector.shape_cast %12 : vector<1x1x32xf32> to vector<1x32xf32>
    %cst = arith.constant dense<0.000000e+00> : vector<2x8xf32>
    %14 = vector.multi_reduction <add>, %3, %cst [2] : vector<2x8x32xf32> to vector<2x8xf32>
    %15 = vector.shape_cast %14 : vector<2x8xf32> to vector<2x8x1xf32>
    %cst_15 = arith.constant 3.200000e+01 : f32
    %16 = vector.broadcast %cst_15 : f32 to vector<2x8x1xf32>
    %17 = arith.divf %15, %16 : vector<2x8x1xf32>
    %18 = vector.broadcast %17 : vector<2x8x1xf32> to vector<2x8x32xf32>
    %19 = arith.subf %3, %18 : vector<2x8x32xf32>
    %20 = arith.mulf %19, %19 : vector<2x8x32xf32>
    %cst_16 = arith.constant dense<0.000000e+00> : vector<2x8xf32>
    %21 = vector.multi_reduction <add>, %20, %cst_16 [2] : vector<2x8x32xf32> to vector<2x8xf32>
    %22 = vector.shape_cast %21 : vector<2x8xf32> to vector<2x8x1xf32>
    %cst_17 = arith.constant 3.200000e+01 : f32
    %23 = vector.broadcast %cst_17 : f32 to vector<2x8x1xf32>
    %24 = arith.divf %22, %23 : vector<2x8x1xf32>
    %cst_18 = arith.constant 9.99999974E-6 : f32
    %25 = vector.broadcast %cst_18 : f32 to vector<2x8x1xf32>
    %26 = arith.addf %24, %25 : vector<2x8x1xf32>
    %27 = math.rsqrt %26 : vector<2x8x1xf32>
    %28 = vector.broadcast %27 : vector<2x8x1xf32> to vector<2x8x32xf32>
    %29 = arith.mulf %19, %28 : vector<2x8x32xf32>
    %30 = vector.shape_cast %11 : vector<1x32xf32> to vector<1x1x32xf32>
    %31 = vector.broadcast %30 : vector<1x1x32xf32> to vector<2x8x32xf32>
    %32 = arith.mulf %29, %31 : vector<2x8x32xf32>
    %33 = vector.shape_cast %13 : vector<1x32xf32> to vector<1x1x32xf32>
    %34 = vector.broadcast %33 : vector<1x1x32xf32> to vector<2x8x32xf32>
    %35 = arith.addf %32, %34 : vector<2x8x32xf32>
    %36 = vector.shape_cast %35 : vector<2x8x32xf32> to vector<16x32xf32>
    %37 = arith.truncf %36 : vector<16x32xf32> to vector<16x32xbf16>
    %c0_19 = arith.constant 0 : index
    %c0_20 = arith.constant 0 : index
    %c0_21 = arith.constant 0 : index
    %38 = vector.load %arg7[%c0_19, %c0_20, %c0_21] : memref<1x32x96xbf16, #tpu.memory_space<vmem>>, vector<1x32x96xbf16>
    %39 = vector.shape_cast %38 : vector<1x32x96xbf16> to vector<32x96xbf16>
    %cst_22 = arith.constant dense<0.000000e+00> : vector<16x96xf32>
    %40 = tpu.matmul %37, %39, %cst_22 {dimension_numbers = #tpu.dot_dimension_numbers<[1], [0], [0], [1], [0, 0, 1, 1], [], []>} : vector<16x32xbf16>, vector<32x96xbf16>, vector<16x96xf32> -> vector<16x96xf32>
    %c0_23 = arith.constant 0 : index
    %c0_24 = arith.constant 0 : index
    %c0_25 = arith.constant 0 : index
    %41 = vector.load %arg8[%c0_23, %c0_24, %c0_25] : memref<1x1x96xf32, #tpu.memory_space<vmem>>, vector<1x1x96xf32>
    %42 = vector.shape_cast %41 : vector<1x1x96xf32> to vector<1x96xf32>
    %43 = vector.broadcast %42 : vector<1x96xf32> to vector<16x96xf32>
    %44 = arith.addf %40, %43 : vector<16x96xf32>
    %45 = vector.extract_strided_slice %44 {offsets = [0, 0], sizes = [16, 32], strides = [1, 1]} : vector<16x96xf32> to vector<16x32xf32>
    %46 = vector.extract_strided_slice %45 {offsets = [0, 0], sizes = [16, 8], strides = [1, 1]} : vector<16x32xf32> to vector<16x8xf32>
    %47 = vector.extract_strided_slice %45 {offsets = [0, 8], sizes = [16, 8], strides = [1, 1]} : vector<16x32xf32> to vector<16x8xf32>
    %48 = vector.extract_strided_slice %45 {offsets = [0, 16], sizes = [16, 8], strides = [1, 1]} : vector<16x32xf32> to vector<16x8xf32>
    %49 = vector.extract_strided_slice %45 {offsets = [0, 24], sizes = [16, 8], strides = [1, 1]} : vector<16x32xf32> to vector<16x8xf32>
    %50 = tpu.concatenate %46, %47, %48, %49 in 0 : vector<16x8xf32>, vector<16x8xf32>, vector<16x8xf32>, vector<16x8xf32> -> vector<64x8xf32>
    %51 = vector.shape_cast %50 : vector<64x8xf32> to vector<8x8x8xf32>
    %52 = vector.extract_strided_slice %44 {offsets = [0, 32], sizes = [16, 32], strides = [1, 1]} : vector<16x96xf32> to vector<16x32xf32>
    %53 = vector.extract_strided_slice %52 {offsets = [0, 0], sizes = [16, 8], strides = [1, 1]} : vector<16x32xf32> to vector<16x8xf32>
    %54 = vector.extract_strided_slice %52 {offsets = [0, 8], sizes = [16, 8], strides = [1, 1]} : vector<16x32xf32> to vector<16x8xf32>
    %55 = vector.extract_strided_slice %52 {offsets = [0, 16], sizes = [16, 8], strides = [1, 1]} : vector<16x32xf32> to vector<16x8xf32>
    %56 = vector.extract_strided_slice %52 {offsets = [0, 24], sizes = [16, 8], strides = [1, 1]} : vector<16x32xf32> to vector<16x8xf32>
    %57 = tpu.concatenate %53, %54, %55, %56 in 0 : vector<16x8xf32>, vector<16x8xf32>, vector<16x8xf32>, vector<16x8xf32> -> vector<64x8xf32>
    %58 = vector.shape_cast %57 : vector<64x8xf32> to vector<8x8x8xf32>
    %59 = vector.extract_strided_slice %44 {offsets = [0, 64], sizes = [16, 32], strides = [1, 1]} : vector<16x96xf32> to vector<16x32xf32>
    %60 = vector.extract_strided_slice %59 {offsets = [0, 0], sizes = [16, 8], strides = [1, 1]} : vector<16x32xf32> to vector<16x8xf32>
    %61 = vector.extract_strided_slice %59 {offsets = [0, 8], sizes = [16, 8], strides = [1, 1]} : vector<16x32xf32> to vector<16x8xf32>
    %62 = vector.extract_strided_slice %59 {offsets = [0, 16], sizes = [16, 8], strides = [1, 1]} : vector<16x32xf32> to vector<16x8xf32>
    %63 = vector.extract_strided_slice %59 {offsets = [0, 24], sizes = [16, 8], strides = [1, 1]} : vector<16x32xf32> to vector<16x8xf32>
    %64 = tpu.concatenate %60, %61, %62, %63 in 0 : vector<16x8xf32>, vector<16x8xf32>, vector<16x8xf32>, vector<16x8xf32> -> vector<64x8xf32>
    %65 = vector.shape_cast %64 : vector<64x8xf32> to vector<8x8x8xf32>
    %66 = arith.truncf %51 : vector<8x8x8xf32> to vector<8x8x8xbf16>
    %67 = arith.truncf %58 : vector<8x8x8xf32> to vector<8x8x8xbf16>
    "tpu.trace_start"() <{level = 10 : i32, message = "gqd,gkd->gqk"}> : () -> ()
    %cst_26 = arith.constant dense<0.000000e+00> : vector<8x8x8xf32>
    %68 = tpu.matmul %66, %67, %cst_26 {dimension_numbers = #tpu.dot_dimension_numbers<[2], [2], [1], [1], [0, 0, 0, 1, 1, 1], [0], [0]>} : vector<8x8x8xbf16>, vector<8x8x8xbf16>, vector<8x8x8xf32> -> vector<8x8x8xf32>
    "tpu.trace_stop"() : () -> ()
    %cst_27 = arith.constant 0.353553385 : f32
    %69 = vector.broadcast %cst_27 : f32 to vector<8x8x8xf32>
    %70 = arith.mulf %68, %69 : vector<8x8x8xf32>
    %cst_28 = arith.constant 0.000000e+00 : f32
    %71 = vector.broadcast %cst_28 : f32 to vector<8x8x8xf32>
    %72 = arith.cmpf oeq, %9, %71 : vector<8x8x8xf32>
    %cst_29 = arith.constant -1.000000e+09 : f32
    %73 = vector.broadcast %cst_29 : f32 to vector<8x8x8xf32>
    %74 = arith.select %72, %73, %70 : vector<8x8x8xi1>, vector<8x8x8xf32>
    %cst_30 = arith.constant dense<0xFF800000> : vector<8x8xf32>
    %75 = vector.multi_reduction <maximumf>, %74, %cst_30 [2] : vector<8x8x8xf32> to vector<8x8xf32>
    %76 = vector.shape_cast %75 : vector<8x8xf32> to vector<8x8x1xf32>
    %77 = vector.broadcast %76 : vector<8x8x1xf32> to vector<8x8x8xf32>
    %78 = arith.subf %74, %77 : vector<8x8x8xf32>
    %79 = math.exp %78 : vector<8x8x8xf32>
    %cst_31 = arith.constant dense<0.000000e+00> : vector<8x8xf32>
    %80 = vector.multi_reduction <add>, %79, %cst_31 [2] : vector<8x8x8xf32> to vector<8x8xf32>
    %81 = vector.shape_cast %80 : vector<8x8xf32> to vector<8x8x1xf32>
    %82 = tpu.reciprocal %81 {approx = true} : vector<8x8x1xf32> -> vector<8x8x1xf32>
    %83 = vector.broadcast %82 : vector<8x8x1xf32> to vector<8x8x8xf32>
    %84 = arith.mulf %79, %83 : vector<8x8x8xf32>
    %85 = arith.truncf %84 : vector<8x8x8xf32> to vector<8x8x8xbf16>
    %86 = arith.truncf %65 : vector<8x8x8xf32> to vector<8x8x8xbf16>
    "tpu.trace_start"() <{level = 10 : i32, message = "gqk,gkd->gqd"}> : () -> ()
    %cst_32 = arith.constant dense<0.000000e+00> : vector<8x8x8xf32>
    %87 = tpu.matmul %85, %86, %cst_32 {dimension_numbers = #tpu.dot_dimension_numbers<[2], [1], [1], [2], [0, 0, 0, 1, 1, 2], [0], [0]>} : vector<8x8x8xbf16>, vector<8x8x8xbf16>, vector<8x8x8xf32> -> vector<8x8x8xf32>
    "tpu.trace_stop"() : () -> ()
    %88 = vector.shape_cast %87 : vector<8x8x8xf32> to vector<4x16x8xf32>
    %89 = vector.extract_strided_slice %88 {offsets = [0, 0, 0], sizes = [1, 16, 8], strides = [1, 1, 1]} : vector<4x16x8xf32> to vector<1x16x8xf32>
    %90 = vector.shape_cast %89 : vector<1x16x8xf32> to vector<16x8xf32>
    %91 = vector.extract_strided_slice %88 {offsets = [1, 0, 0], sizes = [1, 16, 8], strides = [1, 1, 1]} : vector<4x16x8xf32> to vector<1x16x8xf32>
    %92 = vector.shape_cast %91 : vector<1x16x8xf32> to vector<16x8xf32>
    %93 = vector.extract_strided_slice %88 {offsets = [2, 0, 0], sizes = [1, 16, 8], strides = [1, 1, 1]} : vector<4x16x8xf32> to vector<1x16x8xf32>
    %94 = vector.shape_cast %93 : vector<1x16x8xf32> to vector<16x8xf32>
    %95 = vector.extract_strided_slice %88 {offsets = [3, 0, 0], sizes = [1, 16, 8], strides = [1, 1, 1]} : vector<4x16x8xf32> to vector<1x16x8xf32>
    %96 = vector.shape_cast %95 : vector<1x16x8xf32> to vector<16x8xf32>
    %97 = tpu.concatenate %90, %92, %94, %96 in 1 : vector<16x8xf32>, vector<16x8xf32>, vector<16x8xf32>, vector<16x8xf32> -> vector<16x32xf32>
    %98 = arith.truncf %97 : vector<16x32xf32> to vector<16x32xbf16>
    %c0_33 = arith.constant 0 : index
    %c0_34 = arith.constant 0 : index
    %c0_35 = arith.constant 0 : index
    %99 = vector.load %arg9[%c0_33, %c0_34, %c0_35] : memref<1x32x32xbf16, #tpu.memory_space<vmem>>, vector<1x32x32xbf16>
    %100 = vector.shape_cast %99 : vector<1x32x32xbf16> to vector<32x32xbf16>
    %cst_36 = arith.constant dense<0.000000e+00> : vector<16x32xf32>
    %101 = tpu.matmul %98, %100, %cst_36 {dimension_numbers = #tpu.dot_dimension_numbers<[1], [0], [0], [1], [0, 0, 1, 1], [], []>} : vector<16x32xbf16>, vector<32x32xbf16>, vector<16x32xf32> -> vector<16x32xf32>
    %c0_37 = arith.constant 0 : index
    %c0_38 = arith.constant 0 : index
    %c0_39 = arith.constant 0 : index
    %102 = vector.load %arg10[%c0_37, %c0_38, %c0_39] : memref<1x1x32xf32, #tpu.memory_space<vmem>>, vector<1x1x32xf32>
    %103 = vector.shape_cast %102 : vector<1x1x32xf32> to vector<1x32xf32>
    %104 = vector.broadcast %103 : vector<1x32xf32> to vector<16x32xf32>
    %105 = arith.addf %101, %104 : vector<16x32xf32>
    %c0_40 = arith.constant 0 : index
    %c0_41 = arith.constant 0 : index
    %c0_42 = arith.constant 0 : index
    %106 = vector.load %arg11[%c0_40, %c0_41, %c0_42] : memref<1x1x32xf32, #tpu.memory_space<vmem>>, vector<1x1x32xf32>
    %107 = vector.shape_cast %106 : vector<1x1x32xf32> to vector<1x32xf32>
    %c0_43 = arith.constant 0 : index
    %c0_44 = arith.constant 0 : index
    %c0_45 = arith.constant 0 : index
    %108 = vector.load %arg12[%c0_43, %c0_44, %c0_45] : memref<1x1x32xf32, #tpu.memory_space<vmem>>, vector<1x1x32xf32>
    %109 = vector.shape_cast %108 : vector<1x1x32xf32> to vector<1x32xf32>
    %cst_46 = arith.constant dense<0.000000e+00> : vector<2x8xf32>
    %110 = vector.multi_reduction <add>, %3, %cst_46 [2] : vector<2x8x32xf32> to vector<2x8xf32>
    %111 = vector.shape_cast %110 : vector<2x8xf32> to vector<2x8x1xf32>
    %cst_47 = arith.constant 3.200000e+01 : f32
    %112 = vector.broadcast %cst_47 : f32 to vector<2x8x1xf32>
    %113 = arith.divf %111, %112 : vector<2x8x1xf32>
    %114 = vector.broadcast %113 : vector<2x8x1xf32> to vector<2x8x32xf32>
    %115 = arith.subf %3, %114 : vector<2x8x32xf32>
    %116 = arith.mulf %115, %115 : vector<2x8x32xf32>
    %cst_48 = arith.constant dense<0.000000e+00> : vector<2x8xf32>
    %117 = vector.multi_reduction <add>, %116, %cst_48 [2] : vector<2x8x32xf32> to vector<2x8xf32>
    %118 = vector.shape_cast %117 : vector<2x8xf32> to vector<2x8x1xf32>
    %cst_49 = arith.constant 3.200000e+01 : f32
    %119 = vector.broadcast %cst_49 : f32 to vector<2x8x1xf32>
    %120 = arith.divf %118, %119 : vector<2x8x1xf32>
    %cst_50 = arith.constant 9.99999974E-6 : f32
    %121 = vector.broadcast %cst_50 : f32 to vector<2x8x1xf32>
    %122 = arith.addf %120, %121 : vector<2x8x1xf32>
    %123 = math.rsqrt %122 : vector<2x8x1xf32>
    %124 = vector.broadcast %123 : vector<2x8x1xf32> to vector<2x8x32xf32>
    %125 = arith.mulf %115, %124 : vector<2x8x32xf32>
    %126 = vector.shape_cast %107 : vector<1x32xf32> to vector<1x1x32xf32>
    %127 = vector.broadcast %126 : vector<1x1x32xf32> to vector<2x8x32xf32>
    %128 = arith.mulf %125, %127 : vector<2x8x32xf32>
    %129 = vector.shape_cast %109 : vector<1x32xf32> to vector<1x1x32xf32>
    %130 = vector.broadcast %129 : vector<1x1x32xf32> to vector<2x8x32xf32>
    %131 = arith.addf %128, %130 : vector<2x8x32xf32>
    %132 = vector.shape_cast %131 : vector<2x8x32xf32> to vector<16x32xf32>
    %133 = arith.truncf %132 : vector<16x32xf32> to vector<16x32xbf16>
    %c0_51 = arith.constant 0 : index
    %c0_52 = arith.constant 0 : index
    %c0_53 = arith.constant 0 : index
    %134 = vector.load %arg13[%c0_51, %c0_52, %c0_53] : memref<1x32x128xbf16, #tpu.memory_space<vmem>>, vector<1x32x128xbf16>
    %135 = vector.shape_cast %134 : vector<1x32x128xbf16> to vector<32x128xbf16>
    %cst_54 = arith.constant dense<0.000000e+00> : vector<16x128xf32>
    %136 = tpu.matmul %133, %135, %cst_54 {dimension_numbers = #tpu.dot_dimension_numbers<[1], [0], [0], [1], [0, 0, 1, 1], [], []>} : vector<16x32xbf16>, vector<32x128xbf16>, vector<16x128xf32> -> vector<16x128xf32>
    %c0_55 = arith.constant 0 : index
    %c0_56 = arith.constant 0 : index
    %c0_57 = arith.constant 0 : index
    %137 = vector.load %arg14[%c0_55, %c0_56, %c0_57] : memref<1x1x128xf32, #tpu.memory_space<vmem>>, vector<1x1x128xf32>
    %138 = vector.shape_cast %137 : vector<1x1x128xf32> to vector<1x128xf32>
    %139 = vector.broadcast %138 : vector<1x128xf32> to vector<16x128xf32>
    %140 = arith.addf %136, %139 : vector<16x128xf32>
    %cst_58 = arith.constant 5.000000e-01 : f32
    %141 = vector.broadcast %cst_58 : f32 to vector<16x128xf32>
    %142 = arith.mulf %141, %140 : vector<16x128xf32>
    %143 = arith.mulf %140, %140 : vector<16x128xf32>
    %144 = arith.mulf %143, %140 : vector<16x128xf32>
    %cst_59 = arith.constant 4.471500e-02 : f32
    %145 = vector.broadcast %cst_59 : f32 to vector<16x128xf32>
    %146 = arith.mulf %145, %144 : vector<16x128xf32>
    %147 = arith.addf %140, %146 : vector<16x128xf32>
    %cst_60 = arith.constant 0.797884583 : f32
    %148 = vector.broadcast %cst_60 : f32 to vector<16x128xf32>
    %149 = arith.mulf %148, %147 : vector<16x128xf32>
    %150 = math.tanh %149 : vector<16x128xf32>
    %cst_61 = arith.constant 1.000000e+00 : f32
    %151 = vector.broadcast %cst_61 : f32 to vector<16x128xf32>
    %152 = arith.addf %151, %150 : vector<16x128xf32>
    %153 = arith.mulf %142, %152 : vector<16x128xf32>
    %154 = arith.truncf %153 : vector<16x128xf32> to vector<16x128xbf16>
    %c0_62 = arith.constant 0 : index
    %c0_63 = arith.constant 0 : index
    %c0_64 = arith.constant 0 : index
    %155 = vector.load %arg15[%c0_62, %c0_63, %c0_64] : memref<1x128x32xbf16, #tpu.memory_space<vmem>>, vector<1x128x32xbf16>
    %156 = vector.shape_cast %155 : vector<1x128x32xbf16> to vector<128x32xbf16>
    %cst_65 = arith.constant dense<0.000000e+00> : vector<16x32xf32>
    %157 = tpu.matmul %154, %156, %cst_65 {dimension_numbers = #tpu.dot_dimension_numbers<[1], [0], [0], [1], [0, 0, 1, 1], [], []>} : vector<16x128xbf16>, vector<128x32xbf16>, vector<16x32xf32> -> vector<16x32xf32>
    %c0_66 = arith.constant 0 : index
    %c0_67 = arith.constant 0 : index
    %c0_68 = arith.constant 0 : index
    %158 = vector.load %arg16[%c0_66, %c0_67, %c0_68] : memref<1x1x32xf32, #tpu.memory_space<vmem>>, vector<1x1x32xf32>
    %159 = vector.shape_cast %158 : vector<1x1x32xf32> to vector<1x32xf32>
    %160 = vector.broadcast %159 : vector<1x32xf32> to vector<16x32xf32>
    %161 = arith.addf %157, %160 : vector<16x32xf32>
    %162 = vector.shape_cast %105 : vector<16x32xf32> to vector<2x8x32xf32>
    %163 = arith.addf %3, %162 : vector<2x8x32xf32>
    %164 = vector.shape_cast %161 : vector<16x32xf32> to vector<2x8x32xf32>
    %165 = arith.addf %163, %164 : vector<2x8x32xf32>
    %c0_69 = arith.constant 0 : index
    %c0_70 = arith.constant 0 : index
    %c0_71 = arith.constant 0 : index
    %166 = vector.load %arg17[%c0_69, %c0_70, %c0_71] : memref<2x8x32xf32, #tpu.memory_space<vmem>>, vector<2x8x32xf32>
    tpu.vector_store %arg17[%c0_69, %c0_70, %c0_71], %165 {strides = array<i32>} : memref<2x8x32xf32, #tpu.memory_space<vmem>>, vector<2x8x32xf32>,
    return
  }
  func.func @transform_0(%arg0: i32, %arg1: i32) -> (i32, i32, i32) {
    %c0_i32 = arith.constant 0 : i32
    %c0_i32_0 = arith.constant 0 : i32
    %c0_i32_1 = arith.constant 0 : i32
    return %arg0, %c0_i32, %c0_i32_0 : i32, i32, i32
  }
  func.func @transform_1(%arg0: i32, %arg1: i32) -> (i32, i32, i32) {
    %c0_i32 = arith.constant 0 : i32
    %c0_i32_0 = arith.constant 0 : i32
    %c0_i32_1 = arith.constant 0 : i32
    return %arg0, %c0_i32, %c0_i32_0 : i32, i32, i32
  }
  func.func @transform_2(%arg0: i32, %arg1: i32) -> (i32, i32, i32) {
    %c0_i32 = arith.constant 0 : i32
    %c0_i32_0 = arith.constant 0 : i32
    %c0_i32_1 = arith.constant 0 : i32
    return %arg0, %c0_i32, %c0_i32_0 : i32, i32, i32
  }
  func.func @transform_3(%arg0: i32, %arg1: i32) -> (i32, i32, i32) {
    %c0_i32 = arith.constant 0 : i32
    %c0_i32_0 = arith.constant 0 : i32
    %c0_i32_1 = arith.constant 0 : i32
    return %arg1, %c0_i32, %c0_i32_0 : i32, i32, i32
  }
  func.func @transform_4(%arg0: i32, %arg1: i32) -> (i32, i32, i32) {
    %c0_i32 = arith.constant 0 : i32
    %c0_i32_0 = arith.constant 0 : i32
    %c0_i32_1 = arith.constant 0 : i32
    return %arg1, %c0_i32, %c0_i32_0 : i32, i32, i32
  }
  func.func @transform_5(%arg0: i32, %arg1: i32) -> (i32, i32, i32) {
    %c0_i32 = arith.constant 0 : i32
    %c0_i32_0 = arith.constant 0 : i32
    %c0_i32_1 = arith.constant 0 : i32
    return %arg1, %c0_i32, %c0_i32_0 : i32, i32, i32
  }
  func.func @transform_6(%arg0: i32, %arg1: i32) -> (i32, i32, i32) {
    %c0_i32 = arith.constant 0 : i32
    %c0_i32_0 = arith.constant 0 : i32
    %c0_i32_1 = arith.constant 0 : i32
    return %arg1, %c0_i32, %c0_i32_0 : i32, i32, i32
  }
  func.func @transform_7(%arg0: i32, %arg1: i32) -> (i32, i32, i32) {
    %c0_i32 = arith.constant 0 : i32
    %c0_i32_0 = arith.constant 0 : i32
    %c0_i32_1 = arith.constant 0 : i32
    return %arg1, %c0_i32, %c0_i32_0 : i32, i32, i32
  }
  func.func @transform_8(%arg0: i32, %arg1: i32) -> (i32, i32, i32) {
    %c0_i32 = arith.constant 0 : i32
    %c0_i32_0 = arith.constant 0 : i32
    %c0_i32_1 = arith.constant 0 : i32
    return %arg1, %c0_i32, %c0_i32_0 : i32, i32, i32
  }
  func.func @transform_9(%arg0: i32, %arg1: i32) -> (i32, i32, i32) {
    %c0_i32 = arith.constant 0 : i32
    %c0_i32_0 = arith.constant 0 : i32
    %c0_i32_1 = arith.constant 0 : i32
    return %arg1, %c0_i32, %c0_i32_0 : i32, i32, i32
  }
  func.func @transform_10(%arg0: i32, %arg1: i32) -> (i32, i32, i32) {
    %c0_i32 = arith.constant 0 : i32
    %c0_i32_0 = arith.constant 0 : i32
    %c0_i32_1 = arith.constant 0 : i32
    return %arg1, %c0_i32, %c0_i32_0 : i32, i32, i32
  }
  func.func @transform_11(%arg0: i32, %arg1: i32) -> (i32, i32, i32) {
    %c0_i32 = arith.constant 0 : i32
    %c0_i32_0 = arith.constant 0 : i32
    %c0_i32_1 = arith.constant 0 : i32
    return %arg1, %c0_i32, %c0_i32_0 : i32, i32, i32
  }
  func.func @transform_12(%arg0: i32, %arg1: i32) -> (i32, i32, i32) {
    %c0_i32 = arith.constant 0 : i32
    %c0_i32_0 = arith.constant 0 : i32
    %c0_i32_1 = arith.constant 0 : i32
    return %arg1, %c0_i32, %c0_i32_0 : i32, i32, i32
  }
  func.func @transform_13(%arg0: i32, %arg1: i32) -> (i32, i32, i32) {
    %c0_i32 = arith.constant 0 : i32
    %c0_i32_0 = arith.constant 0 : i32
    %c0_i32_1 = arith.constant 0 : i32
    return %arg1, %c0_i32, %c0_i32_0 : i32, i32, i32
  }
  func.func @transform_14(%arg0: i32, %arg1: i32) -> (i32, i32, i32) {
    %c0_i32 = arith.constant 0 : i32
    %c0_i32_0 = arith.constant 0 : i32
    %c0_i32_1 = arith.constant 0 : i32
    return %arg1, %c0_i32, %c0_i32_0 : i32, i32, i32
  }
  func.func @transform_15(%arg0: i32, %arg1: i32) -> (i32, i32, i32) {
    %c0_i32 = arith.constant 0 : i32
    %c0_i32_0 = arith.constant 0 : i32
    %c0_i32_1 = arith.constant 0 : i32
    return %arg0, %c0_i32, %c0_i32_0 : i32, i32, i32
  }
}

</mosaic_0001>

<bundles_post_ra>
// kernel: transformer_pattern_encoder.1
= control target key start
LH: loop header
LB: loop body
LE: loop exit
PB: predicated region body
PF: predicated region fallthrough
CT: control target
= control target key end

     0   :  { %s4834_s0 = inlined_call_operand.hbm [shape: f32[2,8,32], index: 0, kind: input, shape index: {}]   ;;  %s4835_s1 = inlined_call_operand.hbm [shape: f32[2,8,1], index: 1, kind: input, shape index: {}]   ;;  %s4836_s2 = inlined_call_operand.hbm [shape: f32[2,1,8], index: 2, kind: input, shape index: {}]   ;;  %s4837_s3 = inlined_call_operand.hbm [shape: f32[2,1,32], index: 3, kind: input, shape index: {}, may-alias: {3,9}]   ;;  %s4838_s4 = inlined_call_operand.hbm [shape: f32[2,1,32], index: 4, kind: input, shape index: {}, may-alias: {4,8,10,14}]   ;;  %s4839_s5 = inlined_call_operand.hbm [shape: bf16[2,32,96], index: 5, kind: input, shape index: {}]   ;;  %s4840_s6 = inlined_call_operand.hbm [shape: f32[2,1,96], index: 6, kind: input, shape index: {}]   ;;  %s4841_s7 = inlined_call_operand.hbm [shape: bf16[2,32,32], index: 7, kind: input, shape index: {}]   ;;  %s4842_s8 = inlined_call_operand.hbm [shape: f32[2,1,32], index: 8, kind: input, shape index: {}, may-alias: {4,8,10,14}]   ;;  %s4843_s9 = inlined_call_operand.hbm [shape: f32[2,1,32], index: 9, kind: input, shape index: {}, may-alias: {3,9}]   ;;  %s4844_s10 = inlined_call_operand.hbm [shape: f32[2,1,32], index: 10, kind: input, shape index: {}, may-alias: {4,8,10,14}]   ;;  %s4845_s11 = inlined_call_operand.hbm [shape: bf16[2,32,128], index: 11, kind: input, shape index: {}]   ;;  %s4846_s12 = inlined_call_operand.hbm [shape: f32[2,1,128], index: 12, kind: input, shape index: {}]   ;;  %s4847_s13 = inlined_call_operand.hbm [shape: bf16[2,128,32], index: 13, kind: input, shape index: {}]   ;;  %s4848_s14 = inlined_call_operand.hbm [shape: f32[2,1,32], index: 14, kind: input, shape index: {}, may-alias: {4,8,10,14}]   ;;  %s4849_s15 = inlined_call_operand.hbm [shape: f32[2,8,32], index: 15, kind: output, shape index: {}]  }
   0x1   :  { %4884 = sst [smem:[#allocation45_spill]] %s4835_s1 }
   0x2   :  { %4885 = sst [smem:[#allocation46_spill]] %s4837_s3 }
   0x3   :  { %4886 = sst [smem:[#allocation47_spill]] %s4839_s5 }
   0x4   :  { %4887 = sst [smem:[#allocation48_spill]] %s4841_s7 }
   0x5   :  { %4888 = sst [smem:[#allocation49_spill]] %s4843_s9 }
   0x6   :  { %4889 = sst [smem:[#allocation50_spill]] %s4844_s10 }
   0x7   :  { %4890 = sst [smem:[#allocation51_spill]] %s4846_s12 }
   0x8   :  { %4891 = sst [smem:[#allocation52_spill]] %s4848_s14 }
   0x9   :  { %4892 = sst [smem:[#allocation53_spill]] %s4849_s15 }
   0xa   :  { %20 = vsyncpa [#allocation3], 0 }
   0xb   :  { %21 = vsyncpa [#allocation6], 0 }
   0xc   :  { %22 = vsyncpa [#allocation9], 0 }
   0xd   :  { %24 = vsyncpa [#allocation9 + $0x1], 0 }
   0xe   :  { %25 = vsyncpa [#allocation12], 0 }
   0xf   :  { %27 = vsyncpa [#allocation12 + $0x1], 0 }
  0x10   :  { %28 = vsyncpa [#allocation15], 0 }
  0x11   :  { %30 = vsyncpa [#allocation15 + $0x1], 0 }
  0x12   :  { %31 = vsyncpa [#allocation18], 0 }
  0x13   :  { %33 = vsyncpa [#allocation18 + $0x1], 0 }
  0x14   :  { %34 = vsyncpa [#allocation21], 0 }
  0x15   :  { %36 = vsyncpa [#allocation21 + $0x1], 0 }
  0x16   :  { %37 = vsyncpa [#allocation24], 0 }
  0x17   :  { %39 = vsyncpa [#allocation24 + $0x1], 0 }
  0x18   :  { %40 = vsyncpa [#allocation4], 0  ;;  %s3890_s18 = smov 0   ;;  %s3892_s19 = smov 0  }
  0x19   :  { %s3894_s20 = smov 0   ;;  %s3896_s21 = smov 0  }
  0x1a   :  { %s3898_s22 = smov 0   ;;  %s3900_s23 = smov 0  }
  0x1b LB: > { %4893 = sst [smem:[#allocation36_spill]] %s3758_s19  ;;  %s3919_s24 = sadd.s32 4294967295, %s3774_s23   ;;  %s3774_s23 = sphi %s3900_s23, %s46_s23   ;;  %s3770_s22 = sphi %s3898_s22, %s4959_s22   ;;  %s3766_s21 = sphi %s3896_s21, %s4958_s21   ;;  %s3762_s20 = sphi %s3894_s20, %s4956_s20   ;;  %s3758_s19 = sphi %s3892_s19, %s4955_s19   ;;  %s3754_s18 = sphi %s3890_s18, %s4954_s18  }
  0x1c   : > { %4894 = sst [smem:[#allocation37_spill]] %s3762_s20  ;;  %s55_s25 = sadd.s32 1, %s3770_s22 }
  0x1d   : > { %4895 = sst [smem:[#allocation38_spill]] %s3766_s21  ;;  %p56_p0 = scmp.ge.s32.totalorder %s55_s25, 2 }
  0x1e   : > { %4896 = sst [smem:[#allocation39_spill]] %s3774_s23  ;;  %s143_s26 = sadd.s32 1, %s3762_s20 }
  0x1f   : > { %4897 = sst [smem:[#allocation40_spill]] %s3919_s24  ;;  %p150_p1 = scmp.ne.s32.totalorder %s3762_s20, %s3758_s19 }
  0x20   : > { %p151_p2 = scmp.eq.s32.totalorder %s3774_s23, 0  ;;  %s4961_s25 = smov (%p56_p0, %s55_s25), 0 }
  0x21   : > { %4898 = sst [smem:[#allocation41_spill]] %s4961_s25  ;;  %p156_p4 = scmp.ne.s32.totalorder %s3758_s19, %s3754_s18 }
  0x22   : > { %p3928_p3 = por %p151_p2, %p150_p1  ;;  %s140_s28 = ssub.s32 %s3770_s22, %s4961_s25 }
  0x23   : > { %p4859_p5 = scmp.eq.s32.totalorder %s3919_s24, 0  ;;  %p141_p6 = scmp.eq.s32.totalorder %s140_s28, 0 }
  0x24   : > { %s4899_s27 = scalar_select %p3928_p3, 1, 0 }
  0x25   : > { %p2683_p7 = scmp.ge.s32.totalorder %s3774_s23, 1  ;;  %p3939_p8 = por %p4859_p5, %p156_p4 }
  0x26   : > { %p479_p9 = scmp.lt.s32.totalorder %s3774_s23, 3  ;;  %s3776_s17 = smov [#allocation5]  }
  0x27   : > { %s4900_s29 = scalar_select %p3939_p8, 1, 0 }
  0x28   : > { %s3945_s30 = scalar_select %p141_p6, %s3762_s20, %s143_s26  }
  0x29   : > { %4901 = sst [smem:[#allocation42_spill]] %s4900_s29  ;;  %p3947_p10 = pnand %p2683_p7, %p479_p9 }
  0x2a   : > { %4902 = sst [smem:[#allocation43_spill]] %s3945_s30  ;;  %s510_s18 = sshll.u32 %s3776_s17, 4  ;;  %s511_s18 = int_to_ptr.vmem [resolvable:$true] %s510_s18 }
  0x2b   : > { %s4903_s16 = scalar_select %p3947_p10, 1, 0 }
  0x2c   : > { %p3008_p11 = pneg %p3947_p10  ;;  %s3961_s25 = sand.u32 1, %s3762_s20  }
  0x2d   : > { %4904 = sst [smem:[#allocation44_spill]] %s4903_s16  ;;  %s3964_s26 = sand.u32 1, %s3774_s23  }
  0x2e   : > { %p3955_p12 = pnand %p3008_p11, %p4859_p5  ;;  %s4906_s1 = sld [smem:[#allocation45_spill]] }
  0x30   : > { %s4905_s28 = scalar_select %p3955_p12, 1, 0 }
  0x31   : > { %p3974_p1 = pneg %p3955_p12 }
  0x33   : > { %s4907_s17 = scalar_select %p3974_p1, 1, 0 }
  0x34   : > { %s3222_s21 = scalar_lea.hbm %s4906_s1, 256 }
  0x35   : > { %p3223_p0 = scmp.ne.s32.totalorder %s4906_s1, %s3222_s21  ;;  %p3229_p6 = scmp.lt.u32.totalorder %s3222_s21, %s4906_s1 }
  0x37   : > { %p3225_p2 = pnand %p3974_p1, %p3223_p0 }
  0x39   : > { %p3226_p4 = pneg %p3225_p2 }
  0x3b   : > { %p3231_p7 = pnand %p3229_p6, %p3226_p4 }
  0x3d   : > { %3234 = shalt.err (!%p3231_p7)
}
  0x3e   : > { %s3235_s15 = scalar_lea.vmem %s511_s18, 256  ;;  %p3243_p13 = scmp.lt.s32.totalorder %s511_s18, %s511_s18 }
  0x3f   : > { %p3236_p9 = scmp.ne.s32.totalorder %s511_s18, %s3235_s15  ;;  %p3244_p8 = scmp.lt.s32.totalorder %s3235_s15, %s3235_s15 }
  0x41   : > { %p3238_p11 = pnand %p3236_p9, %p3974_p1  ;;  %p3245_p10 = por %p3244_p8, %p3243_p13 }
  0x43   : > { %p3239_p5 = pneg %p3238_p11 }
  0x45   : > { %p3246_p3 = pnand %p3245_p10, %p3239_p5 }
  0x47   : > { %3249 = shalt.err (!%p3246_p3)
}
  0x48   : > { %s4864_s19 = smov 128   ;;  %s4865_s20 = smov 8  }
  0x49   : > { %3014 = dma.hbm_to_vmem [thread:$0]  (!%p3955_p12), %s4906_s1, 256, %s511_s18, [#allocation6], %s4864_s19, %s4864_s19, %s4865_s20  }
  0x4a   : > { %p4908_p8 = scmp.ne.s32.totalorder %s4899_s27, 0  ;;  %p4909_p5 = scmp.lt.s32.totalorder %s3774_s23, 2 }
  0x4b   : > { %s4002_s30 = sshll.u32 %s3770_s22, 4  ;;  %s4911_s3 = sld [smem:[#allocation46_spill]] }
  0x4c   : > { %p3997_p3 = pnand %p4909_p5, %p4908_p8  ;;  %s543_s18 = scalar_lea.vmem [#allocation8], %s3961_s25 }
  0x4d   : > { %s550_s27 = sshll.u32 %s543_s18, 4  ;;  %s4014_s21 = sshll.u32 %s3961_s25, 4  ;;  %s4011_s27 = int_to_ptr.vmem [resolvable:$true] %s550_s27 }
  0x4e   : > { %s4910_s29 = scalar_select %p3997_p3, 1, 0 }
  0x4f   : > { %p4021_p13 = pneg %p3997_p3 }
  0x51   : > { %s4008_s14 = scalar_lea.hbm %s4911_s3, %s4002_s30  ;;  %s3255_s18 = scalar_lea.hbm %s4911_s3, 32 }
  0x52   : > { %s3250_s19 = scalar_lea.hbm %s4008_s14, 16  ;;  %p3256_p4 = scmp.lt.u32.totalorder %s4008_s14, %s4911_s3 }
  0x53   : > { %p3251_p10 = scmp.ne.s32.totalorder %s4008_s14, %s3250_s19  ;;  %p3257_p6 = scmp.lt.u32.totalorder %s3255_s18, %s3250_s19 }
  0x54   : > { %s4912_s20 = scalar_select %p4021_p13, 1, 0 }
  0x55   : > { %p3253_p0 = pnand %p4021_p13, %p3251_p10  ;;  %p3258_p7 = por %p3257_p6, %p3256_p4 }
  0x56   : > { %p3259_p9 = scmp.lt.u32.totalorder %s3250_s19, %s4008_s14 }
  0x57   : > { %p3254_p2 = pneg %p3253_p0 }
  0x58   : > { %p3260_p11 = por %p3259_p9, %p3258_p7 }
  0x5a   : > { %p3261_p8 = pnand %p3260_p11, %p3254_p2 }
  0x5c   : > { %3264 = shalt.err (!%p3261_p8)
}
  0x5d   : > { %s3265_s24 = scalar_lea.vmem %s4011_s27, 16  ;;  %s3779_s16 = smov [#allocation8]  }
  0x5e   : > { %p3266_p5 = scmp.ne.s32.totalorder %s4011_s27, %s3265_s24  ;;  %s3270_s15 = sshll.u32 %s3779_s16, 4  ;;  %s3271_s15 = int_to_ptr.vmem [resolvable:$false] %s3270_s15 }
  0x5f   : > { %s3272_s1 = scalar_lea.vmem %s3271_s15, 32  ;;  %p3273_p12 = scmp.lt.s32.totalorder %s4011_s27, %s3271_s15 }
  0x60   : > { %p3268_p10 = pnand %p3266_p5, %p4021_p13  ;;  %p3274_p1 = scmp.lt.s32.totalorder %s3272_s1, %s3265_s24 }
  0x62   : > { %p3269_p0 = pneg %p3268_p10  ;;  %p3275_p4 = por %p3274_p1, %p3273_p12 }
  0x64   : > { %p3276_p6 = pnand %p3275_p4, %p3269_p0 }
  0x66   : > { %3279 = shalt.err (!%p3276_p6)
}
  0x67   : > { %s4913_s23 = scalar_lea.sflag [#allocation9], %s3964_s26  ;;  %s4047_s19 = sshll.u32 %s3770_s22, 8 }
  0x68   : > { %3021 = dma.hbm_to_vmem [thread:$0]  (!%p3997_p3), %s4008_s14, 16, %s4011_s27, %s4913_s23  }
  0x69   : > { %s4914_s5 = sld [smem:[#allocation47_spill]]  ;;  %s578_s15 = scalar_lea.vmem [#allocation11], %s4014_s21 }
  0x6a   : > { %s585_s1 = sshll.u32 %s578_s15, 4  ;;  %s4873_s3 = scalar_lea.sflag [#allocation12], %s3964_s26  ;;  %s4056_s1 = int_to_ptr.vmem [resolvable:$true] %s585_s1 }
  0x6f   : > { %s4053_s24 = scalar_lea.hbm %s4914_s5, %s4047_s19  ;;  %s3285_s23 = scalar_lea.hbm %s4914_s5, 512 }
  0x70   : > { %s3280_s12 = scalar_lea.hbm %s4053_s24, 256  ;;  %p3286_p7 = scmp.lt.u32.totalorder %s4053_s24, %s4914_s5 }
  0x71   : > { %p3281_p12 = scmp.ne.s32.totalorder %s4053_s24, %s3280_s12  ;;  %p3287_p9 = scmp.lt.u32.totalorder %s3285_s23, %s3280_s12 }
  0x72   : > { %p3289_p8 = scmp.lt.u32.totalorder %s3280_s12, %s4053_s24 }
  0x73   : > { %p3283_p1 = pnand %p3281_p12, %p4021_p13  ;;  %p3288_p11 = por %p3287_p9, %p3286_p7 }
  0x75   : > { %p3284_p2 = pneg %p3283_p1  ;;  %p3290_p5 = por %p3289_p8, %p3288_p11 }
  0x77   : > { %p3291_p10 = pnand %p3290_p5, %p3284_p2 }
  0x79   : > { %3294 = shalt.err (!%p3291_p10)
}
  0x7a   : > { %s3295_s15 = scalar_lea.vmem %s4056_s1, 256  ;;  %s3780_s14 = smov [#allocation11]  }
  0x7b   : > { %p3296_p0 = scmp.ne.s32.totalorder %s4056_s1, %s3295_s15  ;;  %s3300_s27 = sshll.u32 %s3780_s14, 4  ;;  %s3301_s27 = int_to_ptr.vmem [resolvable:$false] %s3300_s27 }
  0x7c   : > { %s3302_s18 = scalar_lea.vmem %s3301_s27, 512  ;;  %p3303_p12 = scmp.lt.s32.totalorder %s4056_s1, %s3301_s27 }
  0x7d   : > { %p3298_p4 = pnand %p3296_p0, %p4021_p13  ;;  %p3304_p1 = scmp.lt.s32.totalorder %s3302_s18, %s3295_s15 }
  0x7f   : > { %p3299_p6 = pneg %p3298_p4  ;;  %p3305_p7 = por %p3304_p1, %p3303_p12 }
  0x81   : > { %p3306_p9 = pnand %p3305_p7, %p3299_p6 }
  0x83   : > { %3309 = shalt.err (!%p3306_p9)
}
  0x84   : > { %s4875_s12 = smov 64   ;;  %s3782_s23 = smov 4  }
  0x85   : > { %3027 = dma.hbm_to_vmem [thread:$0]  (!%p3997_p3), %s4053_s24, 256, %s4056_s1, %s4873_s3, %s4875_s12, %s4875_s12, %s3782_s23  }
  0x86   : > { %s4915_s7 = sld [smem:[#allocation48_spill]]  ;;  %s616_s27 = scalar_lea.vmem [#allocation14], %s4014_s21 }
  0x87   : > { %s623_s18 = sshll.u32 %s616_s27, 4  ;;  %s4874_s5 = scalar_lea.sflag [#allocation15], %s3964_s26  ;;  %s4092_s18 = int_to_ptr.vmem [resolvable:$true] %s623_s18 }
  0x8c   : > { %s4089_s14 = scalar_lea.hbm %s4915_s7, %s4047_s19  ;;  %s3315_s16 = scalar_lea.hbm %s4915_s7, 512 }
  0x8d   : > { %s3310_s10 = scalar_lea.hbm %s4089_s14, 256  ;;  %p3316_p5 = scmp.lt.u32.totalorder %s4089_s14, %s4915_s7 }
  0x8e   : > { %p3311_p2 = scmp.ne.s32.totalorder %s4089_s14, %s3310_s10  ;;  %p3317_p10 = scmp.lt.u32.totalorder %s3315_s16, %s3310_s10 }
  0x8f   : > { %p3319_p4 = scmp.lt.u32.totalorder %s3310_s10, %s4089_s14 }
  0x90   : > { %p3313_p11 = pnand %p3311_p2, %p4021_p13  ;;  %p3318_p0 = por %p3317_p10, %p3316_p5 }
  0x92   : > { %p3314_p8 = pneg %p3313_p11  ;;  %p3320_p6 = por %p3319_p4, %p3318_p0 }
  0x94   : > { %p3321_p12 = pnand %p3320_p6, %p3314_p8 }
  0x96   : > { %3324 = shalt.err (!%p3321_p12)
}
  0x97   : > { %s3325_s27 = scalar_lea.vmem %s4092_s18, 256  ;;  %s3783_s24 = smov [#allocation14]  }
  0x98   : > { %p3326_p1 = scmp.ne.s32.totalorder %s4092_s18, %s3325_s27  ;;  %s3330_s1 = sshll.u32 %s3783_s24, 4  ;;  %s3331_s1 = int_to_ptr.vmem [resolvable:$false] %s3330_s1 }
  0x99   : > { %s3332_s3 = scalar_lea.vmem %s3331_s1, 512  ;;  %p3333_p2 = scmp.lt.s32.totalorder %s4092_s18, %s3331_s1 }
  0x9a   : > { %p3328_p7 = pnand %p3326_p1, %p4021_p13  ;;  %p3334_p11 = scmp.lt.s32.totalorder %s3332_s3, %s3325_s27 }
  0x9c   : > { %p3329_p9 = pneg %p3328_p7  ;;  %p3335_p5 = por %p3334_p11, %p3333_p2 }
  0x9e   : > { %p3336_p10 = pnand %p3335_p5, %p3329_p9 }
  0xa0   : > { %3339 = shalt.err (!%p3336_p10)
}
  0xa1   : > { %3033 = dma.hbm_to_vmem [thread:$0]  (!%p3997_p3), %s4089_s14, 256, %s4092_s18, %s4874_s5, %s4875_s12, %s4875_s12, %s3782_s23  }
  0xa2   : > { %s4916_s9 = sld [smem:[#allocation49_spill]]  ;;  %s653_s27 = scalar_lea.vmem [#allocation17], %s3961_s25 }
  0xa3   : > { %s660_s24 = sshll.u32 %s653_s27, 4  ;;  %s4880_s1 = scalar_lea.sflag [#allocation18], %s3964_s26  ;;  %s661_s24 = int_to_ptr.vmem [resolvable:$true] %s660_s24 }
  0xa8   : > { %s4125_s15 = scalar_lea.hbm %s4916_s9, %s4002_s30  ;;  %s3345_s18 = scalar_lea.hbm %s4916_s9, 32 }
  0xa9   : > { %s3340_s3 = scalar_lea.hbm %s4125_s15, 16  ;;  %p3346_p6 = scmp.lt.u32.totalorder %s4125_s15, %s4916_s9 }
  0xaa   : > { %p3341_p8 = scmp.ne.s32.totalorder %s4125_s15, %s3340_s3  ;;  %p3347_p12 = scmp.lt.u32.totalorder %s3345_s18, %s3340_s3 }
  0xab   : > { %p3349_p7 = scmp.lt.u32.totalorder %s3340_s3, %s4125_s15 }
  0xac   : > { %p3343_p0 = pnand %p3341_p8, %p4021_p13  ;;  %p3348_p1 = por %p3347_p12, %p3346_p6 }
  0xae   : > { %p3344_p4 = pneg %p3343_p0  ;;  %p3350_p9 = por %p3349_p7, %p3348_p1 }
  0xb0   : > { %p3351_p2 = pnand %p3350_p9, %p3344_p4 }
  0xb2   : > { %3354 = shalt.err (!%p3351_p2)
}
  0xb3   : > { %s3355_s27 = scalar_lea.vmem %s661_s24, 16  ;;  %s3784_s5 = smov [#allocation17]  }
  0xb4   : > { %p3356_p11 = scmp.ne.s32.totalorder %s661_s24, %s3355_s27  ;;  %s3360_s12 = sshll.u32 %s3784_s5, 4  ;;  %s3361_s12 = int_to_ptr.vmem [resolvable:$false] %s3360_s12 }
  0xb5   : > { %s3362_s7 = scalar_lea.vmem %s3361_s12, 32  ;;  %p3363_p8 = scmp.lt.s32.totalorder %s661_s24, %s3361_s12 }
  0xb6   : > { %p3358_p5 = pnand %p3356_p11, %p4021_p13  ;;  %p3364_p0 = scmp.lt.s32.totalorder %s3362_s7, %s3355_s27 }
  0xb8   : > { %p3359_p10 = pneg %p3358_p5  ;;  %p3365_p3 = por %p3364_p0, %p3363_p8 }
  0xba   : > { %p3366_p6 = pnand %p3365_p3, %p3359_p10 }
  0xbc   : > { %3369 = shalt.err (!%p3366_p6)
}
  0xbd   : > { %p4917_p12 = scmp.ne.s32.totalorder %s4910_s29, 0  ;;  %s4152_s14 = scalar_lea.hbm %s4845_s11, %s4047_s19 }
  0xbe   : > { %s688_s12 = scalar_lea.vmem [#allocation20], %s4014_s21  ;;  %s2704_s10 = sshll.u32 %s3961_s25, 6 }
  0xbf   : > { %3039 = dma.hbm_to_vmem [thread:$0]  (!%p4917_p12), %s4125_s15, 16, %s661_s24, %s4880_s1  }
  0xc0   : > { %s695_s18 = sshll.u32 %s688_s12, 4  ;;  %s4879_s16 = scalar_lea.sflag [#allocation21], %s3964_s26  ;;  %s4155_s18 = int_to_ptr.vmem [resolvable:$true] %s695_s18 }
  0xc1   : > { %s3370_s27 = scalar_lea.hbm %s4152_s14, 256  ;;  %s3375_s19 = scalar_lea.hbm %s4845_s11, 512 }
  0xc2   : > { %p3371_p3 = scmp.ne.s32.totalorder %s4152_s14, %s3370_s27  ;;  %p3376_p7 = scmp.lt.u32.totalorder %s4152_s14, %s4845_s11 }
  0xc3   : > { %p3377_p9 = scmp.lt.u32.totalorder %s3375_s19, %s3370_s27  ;;  %p3379_p11 = scmp.lt.u32.totalorder %s3370_s27, %s4152_s14 }
  0xc4   : > { %p3373_p4 = pnand %p3371_p3, %p4021_p13 }
  0xc5   : > { %p3378_p2 = por %p3377_p9, %p3376_p7 }
  0xc6   : > { %p3374_p1 = pneg %p3373_p4 }
  0xc7   : > { %p3380_p5 = por %p3379_p11, %p3378_p2 }
  0xc9   : > { %p3381_p10 = pnand %p3380_p5, %p3374_p1 }
  0xcb   : > { %3384 = shalt.err (!%p3381_p10)
}
  0xcc   : > { %s3385_s21 = scalar_lea.vmem %s4155_s18, 256  ;;  %s3785_s5 = smov [#allocation20]  }
  0xcd   : > { %p3386_p8 = scmp.ne.s32.totalorder %s4155_s18, %s3385_s21  ;;  %s3390_s12 = sshll.u32 %s3785_s5, 4  ;;  %s3391_s12 = int_to_ptr.vmem [resolvable:$false] %s3390_s12 }
  0xce   : > { %s3392_s15 = scalar_lea.vmem %s3391_s12, 512  ;;  %p3393_p3 = scmp.lt.s32.totalorder %s4155_s18, %s3391_s12 }
  0xcf   : > { %p3388_p0 = pnand %p3386_p8, %p4021_p13  ;;  %p3394_p4 = scmp.lt.s32.totalorder %s3392_s15, %s3385_s21 }
  0xd1   : > { %p3389_p6 = pneg %p3388_p0  ;;  %p3395_p7 = por %p3394_p4, %p3393_p3 }
  0xd3   : > { %p3396_p9 = pnand %p3395_p7, %p3389_p6 }
  0xd5   : > { %3399 = shalt.err (!%p3396_p9)
}
  0xd6   : > { %s4918_s27 = smov 64   ;;  %s2767_s24 = sshll.u32 %s3770_s22, 10 }
  0xd7   : > { %3045 = dma.hbm_to_vmem [thread:$0]  (!%p4917_p12), %s4152_s14, 256, %s4155_s18, %s4879_s16, %s4918_s27, %s4918_s27, %s3782_s23  }
  0xd8   : > { %s4189_s3 = scalar_lea.hbm %s4847_s13, %s2767_s24  ;;  %s726_s21 = scalar_lea.vmem [#allocation23], %s2704_s10 }
  0xd9   : > { %s733_s5 = sshll.u32 %s726_s21, 4  ;;  %s723_s12 = scalar_lea.sflag [#allocation24], %s3964_s26  ;;  %s4193_s5 = int_to_ptr.vmem [resolvable:$true] %s733_s5 }
  0xda   : > { %s3400_s15 = scalar_lea.hbm %s4189_s3, 1024  ;;  %s3405_s24 = scalar_lea.hbm %s4847_s13, 2048 }
  0xdb   : > { %p3401_p1 = scmp.ne.s32.totalorder %s4189_s3, %s3400_s15  ;;  %p3406_p5 = scmp.lt.u32.totalorder %s4189_s3, %s4847_s13 }
  0xdc   : > { %p3407_p10 = scmp.lt.u32.totalorder %s3405_s24, %s3400_s15  ;;  %p3409_p0 = scmp.lt.u32.totalorder %s3400_s15, %s4189_s3 }
  0xdd   : > { %p3403_p2 = pnand %p3401_p1, %p4021_p13 }
  0xde   : > { %p3408_p8 = por %p3407_p10, %p3406_p5 }
  0xdf   : > { %p3404_p11 = pneg %p3403_p2 }
  0xe0   : > { %p3410_p6 = por %p3409_p0, %p3408_p8 }
  0xe2   : > { %p3411_p3 = pnand %p3410_p6, %p3404_p11 }
  0xe4   : > { %3414 = shalt.err (!%p3411_p3)
}
  0xe5   : > { %s3415_s10 = scalar_lea.vmem %s4193_s5, 1024  ;;  %s3786_s21 = smov [#allocation23]  }
  0xe6   : > { %p3416_p4 = scmp.ne.s32.totalorder %s4193_s5, %s3415_s10  ;;  %s3420_s14 = sshll.u32 %s3786_s21, 4  ;;  %s3421_s14 = int_to_ptr.vmem [resolvable:$false] %s3420_s14 }
  0xe7   : > { %s3422_s18 = scalar_lea.vmem %s3421_s14, 2048  ;;  %p3423_p1 = scmp.lt.s32.totalorder %s4193_s5, %s3421_s14 }
  0xe8   : > { %p3418_p7 = pnand %p3416_p4, %p4021_p13  ;;  %p3424_p2 = scmp.lt.s32.totalorder %s3422_s18, %s3415_s10 }
  0xea   : > { %p3419_p9 = pneg %p3418_p7  ;;  %p3425_p5 = por %p3424_p2, %p3423_p1 }
  0xec   : > { %p3426_p10 = pnand %p3425_p5, %p3419_p9 }
  0xee   : > { %3429 = shalt.err (!%p3426_p10)
}
  0xef   : > { %3051 = dma.hbm_to_vmem [thread:$0]  (!%p4917_p12), %s4189_s3, 1024, %s4193_s5, %s723_s12, %s4918_s27, %s4918_s27, %s3782_s23  }
  0xf0   : > { %s3787_s15 = smov [#allocation2]   ;;  %s3788_s19 = smov [#allocation7]  }
  0xf1   : > { %s494_s24 = sshll.u32 %s3787_s15, 4  ;;  %s526_s7 = sshll.u32 %s3788_s19, 4  ;;  %s495_s24 = int_to_ptr.vmem [resolvable:$true] %s494_s24  ;;  %s527_s7 = int_to_ptr.vmem [resolvable:$true] %s526_s7 }
  0xf2   : > { %s3430_s14 = scalar_lea.hbm %s4834_s0, 256  ;;  %p4919_p8 = scmp.ne.s32.totalorder %s4907_s17, 0 }
  0xf3   : > { %p3431_p11 = scmp.ne.s32.totalorder %s4834_s0, %s3430_s14  ;;  %p3437_p3 = scmp.lt.u32.totalorder %s3430_s14, %s4834_s0 }
  0xf5   : > { %p3433_p0 = pnand %p3431_p11, %p4919_p8 }
  0xf7   : > { %p3434_p6 = pneg %p3433_p0 }
  0xf9   : > { %p3439_p4 = pnand %p3437_p3, %p3434_p6 }
  0xfb   : > { %3442 = shalt.err (!%p3439_p4)
}
  0xfc   : > { %s3443_s23 = scalar_lea.vmem %s495_s24, 256  ;;  %p3451_p2 = scmp.lt.s32.totalorder %s495_s24, %s495_s24 }
  0xfd   : > { %p3444_p7 = scmp.ne.s32.totalorder %s495_s24, %s3443_s23  ;;  %p3452_p5 = scmp.lt.s32.totalorder %s3443_s23, %s3443_s23 }
  0xff   : > { %p3446_p9 = pnand %p3444_p7, %p4919_p8  ;;  %p3453_p10 = por %p3452_p5, %p3451_p2 }
 0x101   : > { %p3447_p1 = pneg %p3446_p9 }
 0x103   : > { %p3454_p12 = pnand %p3453_p10, %p3447_p1 }
 0x105   : > { %3457 = shalt.err (!%p3454_p12)
}
 0x106   : > { %p4920_p11 = scmp.ne.s32.totalorder %s4905_s28, 0  ;;  %s4921_s16 = smov 8  }
 0x107   : > { %s4922_s27 = smov 128   ;;  %s3458_s15 = scalar_lea.hbm %s4836_s2, 32 }
 0x108   : > { %3011 = dma.hbm_to_vmem [thread:$0]  (!%p4920_p11), %s4834_s0, 256, %s495_s24, [#allocation3], %s4922_s27, %s4922_s27, %s4921_s16  }
 0x109   : > { %p3459_p0 = scmp.ne.s32.totalorder %s4836_s2, %s3458_s15  ;;  %p3465_p3 = scmp.lt.u32.totalorder %s3458_s15, %s4836_s2 }
 0x10b   : > { %p3461_p12 = pnand %p3459_p0, %p4919_p8 }
 0x10d   : > { %p3462_p6 = pneg %p3461_p12 }
 0x10f   : > { %p3467_p4 = pnand %p3465_p3, %p3462_p6 }
 0x111   : > { %3470 = shalt.err (!%p3467_p4)
}
 0x112   : > { %s3471_s18 = scalar_lea.vmem %s527_s7, 32  ;;  %p3479_p2 = scmp.lt.s32.totalorder %s527_s7, %s527_s7 }
 0x113   : > { %p3472_p7 = scmp.ne.s32.totalorder %s527_s7, %s3471_s18  ;;  %p3480_p5 = scmp.lt.s32.totalorder %s3471_s18, %s3471_s18 }
 0x115   : > { %p3474_p9 = pnand %p3472_p7, %p4919_p8  ;;  %p3481_p10 = por %p3480_p5, %p3479_p2 }
 0x117   : > { %p3475_p1 = pneg %p3474_p9 }
 0x119   : > { %p3482_p13 = pnand %p3481_p10, %p3475_p1 }
 0x11b   : > { %3485 = shalt.err (!%p3482_p13)
}
 0x11c   : > { %s3789_s24 = smov 16   ;;  %s3790_s23 = smov 1  }
 0x11d   : > { %3017 = dma.hbm_to_vmem [thread:$0]  (!%p4920_p11), %s4836_s2, 32, %s527_s7, [#allocation6], %s3789_s24, %s3789_s24, %s3790_s23  }
 0x11e   : > { %s4265_s1 = scalar_lea.hbm %s4838_s4, %s4002_s30  ;;  %s560_s3 = scalar_lea.vmem [#allocation10], %s3961_s25 }
 0x11f   : > { %s567_s5 = sshll.u32 %s560_s3, 4  ;;  %s3486_s15 = scalar_lea.hbm %s4265_s1, 16  ;;  %s568_s5 = int_to_ptr.vmem [resolvable:$true] %s567_s5 }
 0x120   : > { %p3487_p13 = scmp.ne.s32.totalorder %s4265_s1, %s3486_s15  ;;  %p4923_p8 = scmp.ne.s32.totalorder %s4912_s20, 0 }
 0x121   : > { %s3491_s7 = scalar_lea.hbm %s4838_s4, 32  ;;  %p3492_p11 = scmp.lt.u32.totalorder %s4265_s1, %s4838_s4 }
 0x122   : > { %p3489_p0 = pnand %p3487_p13, %p4923_p8  ;;  %p3493_p6 = scmp.lt.u32.totalorder %s3491_s7, %s3486_s15 }
 0x123   : > { %p3495_p4 = scmp.lt.u32.totalorder %s3486_s15, %s4265_s1 }
 0x124   : > { %p3490_p12 = pneg %p3489_p0  ;;  %p3494_p3 = por %p3493_p6, %p3492_p11 }
 0x126   : > { %p3496_p7 = por %p3495_p4, %p3494_p3 }
 0x128   : > { %p3497_p9 = pnand %p3496_p7, %p3490_p12 }
 0x12a   : > { %3500 = shalt.err (!%p3497_p9)
}
 0x12b   : > { %s3501_s14 = scalar_lea.vmem %s568_s5, 16  ;;  %s3791_s18 = smov [#allocation10]  }
 0x12c   : > { %p3502_p1 = scmp.ne.s32.totalorder %s568_s5, %s3501_s14  ;;  %s3506_s24 = sshll.u32 %s3791_s18, 4  ;;  %s3507_s24 = int_to_ptr.vmem [resolvable:$false] %s3506_s24 }
 0x12d   : > { %s3508_s23 = scalar_lea.vmem %s3507_s24, 32  ;;  %p3509_p10 = scmp.lt.s32.totalorder %s568_s5, %s3507_s24 }
 0x12e   : > { %p3504_p2 = pnand %p3502_p1, %p4923_p8  ;;  %p3510_p13 = scmp.lt.s32.totalorder %s3508_s23, %s3501_s14 }
 0x130   : > { %p3505_p5 = pneg %p3504_p2  ;;  %p3511_p0 = por %p3510_p13, %p3509_p10 }
 0x132   : > { %p3512_p6 = pnand %p3511_p0, %p3505_p5 }
 0x134   : > { %3515 = shalt.err (!%p3512_p6)
}
 0x135   : > { %p4924_p11 = scmp.ne.s32.totalorder %s4910_s29, 0  ;;  %s4925_s16 = scalar_lea.sflag [#allocation9], %s3964_s26 }
 0x136   : > { %s4291_s17 = scalar_lea.hbm %s4840_s6, %s4002_s30  ;;  %s598_s3 = scalar_lea.vmem [#allocation13], %s3961_s25 }
 0x137   : > { %3024 = dma.hbm_to_vmem [thread:$0]  (!%p4924_p11), %s4265_s1, 16, %s568_s5, %s4925_s16  }
 0x138   : > { %s605_s15 = sshll.u32 %s598_s3, 4  ;;  %s3516_s28 = scalar_lea.hbm %s4291_s17, 16  ;;  %s606_s15 = int_to_ptr.vmem [resolvable:$true] %s605_s15 }
 0x139   : > { %p3517_p12 = scmp.ne.s32.totalorder %s4291_s17, %s3516_s28  ;;  %s3521_s1 = scalar_lea.hbm %s4840_s6, 32 }
 0x13a   : > { %p3522_p7 = scmp.lt.u32.totalorder %s4291_s17, %s4840_s6  ;;  %p3523_p9 = scmp.lt.u32.totalorder %s3521_s1, %s3516_s28 }
 0x13b   : > { %p3519_p3 = pnand %p3517_p12, %p4923_p8  ;;  %p3525_p2 = scmp.lt.u32.totalorder %s3516_s28, %s4291_s17 }
 0x13c   : > { %p3524_p1 = por %p3523_p9, %p3522_p7 }
 0x13d   : > { %p3520_p4 = pneg %p3519_p3 }
 0x13e   : > { %p3526_p5 = por %p3525_p2, %p3524_p1 }
 0x140   : > { %p3527_p10 = pnand %p3526_p5, %p3520_p4 }
 0x142   : > { %3530 = shalt.err (!%p3527_p10)
}
 0x143   : > { %s3531_s21 = scalar_lea.vmem %s606_s15, 16  ;;  %s3792_s14 = smov [#allocation13]  }
 0x144   : > { %p3532_p13 = scmp.ne.s32.totalorder %s606_s15, %s3531_s21  ;;  %s3536_s18 = sshll.u32 %s3792_s14, 4  ;;  %s3537_s18 = int_to_ptr.vmem [resolvable:$false] %s3536_s18 }
 0x145   : > { %s3538_s24 = scalar_lea.vmem %s3537_s18, 32  ;;  %p3539_p12 = scmp.lt.s32.totalorder %s606_s15, %s3537_s18 }
 0x146   : > { %p3534_p0 = pnand %p3532_p13, %p4923_p8  ;;  %p3540_p3 = scmp.lt.s32.totalorder %s3538_s24, %s3531_s21 }
 0x148   : > { %p3535_p6 = pneg %p3534_p0  ;;  %p3541_p11 = por %p3540_p3, %p3539_p12 }
 0x14a   : > { %p3542_p7 = pnand %p3541_p11, %p3535_p6 }
 0x14c   : > { %3545 = shalt.err (!%p3542_p7)
}
 0x14d   : > { %p4926_p9 = scmp.ne.s32.totalorder %s4910_s29, 0  ;;  %s4927_s23 = scalar_lea.sflag [#allocation12], %s3964_s26 }
 0x14e   : > { %s4317_s9 = scalar_lea.hbm %s4842_s8, %s4002_s30  ;;  %s636_s3 = scalar_lea.vmem [#allocation16], %s3961_s25 }
 0x14f   : > { %3030 = dma.hbm_to_vmem [thread:$0]  (!%p4926_p9), %s4291_s17, 16, %s606_s15, %s4927_s23  }
 0x150   : > { %s643_s28 = sshll.u32 %s636_s3, 4  ;;  %s3546_s19 = scalar_lea.hbm %s4317_s9, 16  ;;  %s644_s28 = int_to_ptr.vmem [resolvable:$true] %s643_s28 }
 0x151   : > { %p3547_p11 = scmp.ne.s32.totalorder %s4317_s9, %s3546_s19  ;;  %s3551_s17 = scalar_lea.hbm %s4842_s8, 32 }
 0x152   : > { %p3552_p2 = scmp.lt.u32.totalorder %s4317_s9, %s4842_s8  ;;  %p3553_p5 = scmp.lt.u32.totalorder %s3551_s17, %s3546_s19 }
 0x153   : > { %p3549_p4 = pnand %p3547_p11, %p4923_p8  ;;  %p3555_p13 = scmp.lt.u32.totalorder %s3546_s19, %s4317_s9 }
 0x154   : > { %p3554_p10 = por %p3553_p5, %p3552_p2 }
 0x155   : > { %p3550_p1 = pneg %p3549_p4 }
 0x156   : > { %p3556_p0 = por %p3555_p13, %p3554_p10 }
 0x158   : > { %p3557_p6 = pnand %p3556_p0, %p3550_p1 }
 0x15a   : > { %3560 = shalt.err (!%p3557_p6)
}
 0x15b   : > { %s3561_s10 = scalar_lea.vmem %s644_s28, 16  ;;  %s3793_s21 = smov [#allocation16]  }
 0x15c   : > { %p3562_p12 = scmp.ne.s32.totalorder %s644_s28, %s3561_s10  ;;  %s3566_s14 = sshll.u32 %s3793_s21, 4  ;;  %s3567_s14 = int_to_ptr.vmem [resolvable:$false] %s3566_s14 }
 0x15d   : > { %s3568_s18 = scalar_lea.vmem %s3567_s14, 32  ;;  %p3569_p11 = scmp.lt.s32.totalorder %s644_s28, %s3567_s14 }
 0x15e   : > { %p3564_p3 = pnand %p3562_p12, %p4923_p8  ;;  %p3570_p4 = scmp.lt.s32.totalorder %s3568_s18, %s3561_s10 }
 0x160   : > { %p3565_p7 = pneg %p3564_p3  ;;  %p3571_p9 = por %p3570_p4, %p3569_p11 }
 0x162   : > { %p3572_p2 = pnand %p3571_p9, %p3565_p7 }
 0x164   : > { %3575 = shalt.err (!%p3572_p2)
}
 0x165   : > { %p4928_p5 = scmp.ne.s32.totalorder %s4910_s29, 0  ;;  %s4929_s24 = scalar_lea.sflag [#allocation15], %s3964_s26 }
 0x166   : > { %s4930_s27 = sld [smem:[#allocation50_spill]]  ;;  %s670_s19 = scalar_lea.vmem [#allocation19], %s3961_s25 }
 0x167   : > { %3036 = dma.hbm_to_vmem [thread:$0]  (!%p4928_p5), %s4317_s9, 16, %s644_s28, %s4929_s24  }
 0x168   : > { %s677_s7 = sshll.u32 %s670_s19, 4  ;;  %s678_s7 = int_to_ptr.vmem [resolvable:$true] %s677_s7 }
 0x16c   : > { %s4343_s3 = scalar_lea.hbm %s4930_s27, %s4002_s30  ;;  %s3581_s9 = scalar_lea.hbm %s4930_s27, 32 }
 0x16d   : > { %s3576_s1 = scalar_lea.hbm %s4343_s3, 16  ;;  %p3582_p13 = scmp.lt.u32.totalorder %s4343_s3, %s4930_s27 }
 0x16e   : > { %p3577_p9 = scmp.ne.s32.totalorder %s4343_s3, %s3576_s1  ;;  %p3583_p0 = scmp.lt.u32.totalorder %s3581_s9, %s3576_s1 }
 0x16f   : > { %p3585_p12 = scmp.lt.u32.totalorder %s3576_s1, %s4343_s3 }
 0x170   : > { %p3579_p1 = pnand %p3577_p9, %p4923_p8  ;;  %p3584_p6 = por %p3583_p0, %p3582_p13 }
 0x172   : > { %p3580_p10 = pneg %p3579_p1  ;;  %p3586_p3 = por %p3585_p12, %p3584_p6 }
 0x174   : > { %p3587_p7 = pnand %p3586_p3, %p3580_p10 }
 0x176   : > { %3590 = shalt.err (!%p3587_p7)
}
 0x177   : > { %s3591_s10 = scalar_lea.vmem %s678_s7, 16  ;;  %s3794_s21 = smov [#allocation19]  }
 0x178   : > { %p3592_p11 = scmp.ne.s32.totalorder %s678_s7, %s3591_s10  ;;  %s3596_s14 = sshll.u32 %s3794_s21, 4  ;;  %s3597_s14 = int_to_ptr.vmem [resolvable:$false] %s3596_s14 }
 0x179   : > { %s3598_s18 = scalar_lea.vmem %s3597_s14, 32  ;;  %p3599_p9 = scmp.lt.s32.totalorder %s678_s7, %s3597_s14 }
 0x17a   : > { %p3594_p4 = pnand %p3592_p11, %p4923_p8  ;;  %p3600_p1 = scmp.lt.s32.totalorder %s3598_s18, %s3591_s10 }
 0x17c   : > { %p3595_p2 = pneg %p3594_p4  ;;  %p3601_p5 = por %p3600_p1, %p3599_p9 }
 0x17e   : > { %p3602_p0 = pnand %p3601_p5, %p3595_p2 }
 0x180   : > { %3605 = shalt.err (!%p3602_p0)
}
 0x181   : > { %p4931_p13 = scmp.ne.s32.totalorder %s4910_s29, 0  ;;  %s4932_s24 = scalar_lea.sflag [#allocation18], %s3964_s26 }
 0x182   : > { %s4933_s19 = sld [smem:[#allocation51_spill]]  ;;  %s708_s15 = scalar_lea.vmem [#allocation22], %s3961_s25 }
 0x183   : > { %3042 = dma.hbm_to_vmem [thread:$0]  (!%p4931_p13), %s4343_s3, 16, %s678_s7, %s4932_s24  }
 0x184   : > { %s715_s9 = sshll.u32 %s708_s15, 4  ;;  %s716_s9 = int_to_ptr.vmem [resolvable:$true] %s715_s9 }
 0x188   : > { %s4934_s1 = smov %s4933_s19  ;;  %s4369_s17 = scalar_lea.hbm %s4933_s19, %s4002_s30 }
 0x189   : > { %s3606_s28 = scalar_lea.hbm %s4369_s17, 16  ;;  %s3611_s3 = scalar_lea.hbm %s4934_s1, 32 }
 0x18a   : > { %p3607_p5 = scmp.ne.s32.totalorder %s4369_s17, %s3606_s28  ;;  %p3612_p12 = scmp.lt.u32.totalorder %s4369_s17, %s4934_s1 }
 0x18b   : > { %p3613_p3 = scmp.lt.u32.totalorder %s3611_s3, %s3606_s28  ;;  %p3615_p11 = scmp.lt.u32.totalorder %s3606_s28, %s4369_s17 }
 0x18c   : > { %p3609_p10 = pnand %p3607_p5, %p4923_p8 }
 0x18d   : > { %p3614_p7 = por %p3613_p3, %p3612_p12 }
 0x18e   : > { %p3610_p6 = pneg %p3609_p10 }
 0x18f   : > { %p3616_p4 = por %p3615_p11, %p3614_p7 }
 0x191   : > { %p3617_p2 = pnand %p3616_p4, %p3610_p6 }
 0x193   : > { %3620 = shalt.err (!%p3617_p2)
}
 0x194   : > { %s3621_s14 = scalar_lea.vmem %s716_s9, 16  ;;  %s3795_s18 = smov [#allocation22]  }
 0x195   : > { %p3622_p9 = scmp.ne.s32.totalorder %s716_s9, %s3621_s14  ;;  %s3626_s24 = sshll.u32 %s3795_s18, 4  ;;  %s3627_s24 = int_to_ptr.vmem [resolvable:$false] %s3626_s24 }
 0x196   : > { %s3628_s23 = scalar_lea.vmem %s3627_s24, 32  ;;  %p3629_p5 = scmp.lt.s32.totalorder %s716_s9, %s3627_s24 }
 0x197   : > { %p3624_p1 = pnand %p3622_p9, %p4923_p8  ;;  %p3630_p10 = scmp.lt.s32.totalorder %s3628_s23, %s3621_s14 }
 0x199   : > { %p3625_p0 = pneg %p3624_p1  ;;  %p3631_p13 = por %p3630_p10, %p3629_p5 }
 0x19b   : > { %p3632_p3 = pnand %p3631_p13, %p3625_p0 }
 0x19d   : > { %3635 = shalt.err (!%p3632_p3)
}
 0x19e   : > { %p4935_p12 = scmp.ne.s32.totalorder %s4910_s29, 0  ;;  %s4936_s16 = scalar_lea.sflag [#allocation21], %s3964_s26 }
 0x19f   : > { %s4937_s28 = sld [smem:[#allocation52_spill]]  ;;  %s746_s10 = scalar_lea.vmem [#allocation25], %s3961_s25 }
 0x1a0   : > { %3048 = dma.hbm_to_vmem [thread:$0]  (!%p4935_p12), %s4369_s17, 16, %s716_s9, %s4936_s16  }
 0x1a1   : > { %s753_s3 = sshll.u32 %s746_s10, 4  ;;  %s754_s3 = int_to_ptr.vmem [resolvable:$true] %s753_s3 }
 0x1a5   : > { %s4395_s5 = scalar_lea.hbm %s4937_s28, %s4002_s30  ;;  %s3641_s17 = scalar_lea.hbm %s4937_s28, 32 }
 0x1a6   : > { %s3636_s7 = scalar_lea.hbm %s4395_s5, 16  ;;  %p3642_p11 = scmp.lt.u32.totalorder %s4395_s5, %s4937_s28 }
 0x1a7   : > { %p3637_p13 = scmp.ne.s32.totalorder %s4395_s5, %s3636_s7  ;;  %p3643_p4 = scmp.lt.u32.totalorder %s3641_s17, %s3636_s7 }
 0x1a8   : > { %p3645_p9 = scmp.lt.u32.totalorder %s3636_s7, %s4395_s5 }
 0x1a9   : > { %p3639_p6 = pnand %p3637_p13, %p4923_p8  ;;  %p3644_p2 = por %p3643_p4, %p3642_p11 }
 0x1ab   : > { %p3640_p7 = pneg %p3639_p6  ;;  %p3646_p1 = por %p3645_p9, %p3644_p2 }
 0x1ad   : > { %p3647_p0 = pnand %p3646_p1, %p3640_p7 }
 0x1af   : > { %3650 = shalt.err (!%p3647_p0)
}
 0x1b0   : > { %s3651_s25 = scalar_lea.vmem %s754_s3, 16  ;;  %s3796_s30 = smov [#allocation25]  }
 0x1b1   : > { %p3652_p5 = scmp.ne.s32.totalorder %s754_s3, %s3651_s25  ;;  %s3656_s24 = sshll.u32 %s3796_s30, 4  ;;  %s3657_s24 = int_to_ptr.vmem [resolvable:$false] %s3656_s24 }
 0x1b2   : > { %s3658_s23 = scalar_lea.vmem %s3657_s24, 32  ;;  %p3659_p13 = scmp.lt.s32.totalorder %s754_s3, %s3657_s24 }
 0x1b3   : > { %p3654_p10 = pnand %p3652_p5, %p4923_p8  ;;  %p3660_p6 = scmp.lt.s32.totalorder %s3658_s23, %s3651_s25 }
 0x1b5   : > { %p3655_p3 = pneg %p3654_p10  ;;  %p3661_p12 = por %p3660_p6, %p3659_p13 }
 0x1b7   : > { %p3662_p4 = pnand %p3661_p12, %p3655_p3 }
 0x1b9   : > { %3665 = shalt.err (!%p3662_p4)
}
 0x1ba   : > { %p4938_p11 = scmp.ne.s32.totalorder %s4910_s29, 0  ;;  %s4939_s16 = sld [smem:[#allocation44_spill]] }
 0x1bc   : > { %3054 = dma.hbm_to_vmem [thread:$0]  (!%p4938_p11), %s4395_s5, 16, %s754_s3, %s723_s12  }
 0x1c0   : > { %p4940_p7 = scmp.ne.s32.totalorder %s4939_s16, 0 }
 0x1c1   : > { %s4941_s20 = sld [smem:[#allocation40_spill]] (!%p4940_p7) }
 0x1c2   : > { %762 = sbr.rel (%p4940_p7) target bundleno = 2481 (0x9b1), region = 80 }
 0x1c7   : > { %p4942_p8 = scmp.eq.s32.totalorder (!%p4940_p7), %s4941_s20, 0 }
 0x1c9   : > { %3717 = dma.done.wait (%p4942_p8), [#allocation3], 256   ;;  %p4943_p2 = pmov %p4942_p8 }
 0x1cb   : > { %3719 = vsyncadd (%p4943_p2), [#allocation3], 4294967040  ;;  %p4944_p9 = pmov %p4943_p2 }
 0x1cc   : > { %p4945_p12 = pmov %p4943_p2 }
 0x1cd   : > { %3721 = dma.done.wait (%p4944_p9), [#allocation6], 288  }
 0x1ce   : > { %3723 = vsyncadd (%p4945_p12), [#allocation6], 4294967008  ;;  %s4946_s29 = sld [smem:[#allocation36_spill]]  ;;  %s4947_s26 = sld [smem:[#allocation42_spill]] }
 0x1cf   : > { %s4428_s19 = sand.u32 1, %s4941_s20  }
 0x1d0   : > { %s777_s15 = scalar_lea.sflag [#allocation9], %s4428_s19 }
 0x1d4   : > { %s4431_s12 = sand.u32 1, %s4946_s29   ;;  %p4948_p1 = scmp.ne.s32.totalorder %s4947_s26, 0 }
 0x1d5   : > { %s779_s5 = scalar_lea.vmem [#allocation8], %s4431_s12 }
 0x1d6   : > { %3725 = dma.done.wait (%p4948_p1), %s777_s15, 32  }
 0x1d7   : > { %3727 = vsyncadd (%p4948_p1), %s777_s15, 4294967264  ;;  %s4440_s10 = sshll.u32 %s4431_s12, 4  ;;  %s787_s3 = scalar_lea.vmem [#allocation10], %s4431_s12 }
 0x1d8   : > { %s793_s7 = scalar_lea.sflag [#allocation12], %s4428_s19  ;;  %s796_s21 = scalar_lea.vmem [#allocation11], %s4440_s10 }
 0x1d9   : > { %3729 = dma.done.wait (%p4948_p1), %s793_s7, 272  }
 0x1da   : > { %3731 = vsyncadd (%p4948_p1), %s793_s7, 4294967024  ;;  %s804_s14 = scalar_lea.vmem [#allocation13], %s4431_s12  ;;  %s810_s17 = scalar_lea.sflag [#allocation15], %s4428_s19 }
 0x1db   : > { %s813_s9 = scalar_lea.vmem [#allocation14], %s4440_s10 }
 0x1dc   : > { %3733 = dma.done.wait (%p4948_p1), %s810_s17, 272  }
 0x1dd   : > { %3735 = vsyncadd (%p4948_p1), %s810_s17, 4294967024  ;;  %s821_s18 = scalar_lea.vmem [#allocation16], %s4431_s12  ;;  %s827_s25 = scalar_lea.sflag [#allocation18], %s4428_s19 }
 0x1de   : > { %s829_s30 = scalar_lea.vmem [#allocation17], %s4431_s12 }
 0x1df   : > { %3737 = dma.done.wait (%p4948_p1), %s827_s25, 32  }
 0x1e0   : > { %3739 = vsyncadd (%p4948_p1), %s827_s25, 4294967264  ;;  %s837_s24 = scalar_lea.vmem [#allocation19], %s4431_s12  ;;  %s843_s23 = scalar_lea.sflag [#allocation21], %s4428_s19 }
 0x1e1   : > { %s846_s16 = scalar_lea.vmem [#allocation20], %s4440_s10 }
 0x1e2   : > { %3741 = dma.done.wait (%p4948_p1), %s843_s23, 272  }
 0x1e3   : > { %3743 = vsyncadd (%p4948_p1), %s843_s23, 4294967024  ;;  %s2715_s20 = sshll.u32 %s4431_s12, 6  ;;  %s854_s29 = scalar_lea.vmem [#allocation22], %s4431_s12 }
 0x1e4   : > { %s860_s15 = scalar_lea.sflag [#allocation24], %s4428_s19  ;;  %s4473_s7 = scalar_lea.vmem [#allocation23], %s2715_s20 }
 0x1e5   : > { %3745 = dma.done.wait (%p4948_p1), %s860_s15, 1040  }
 0x1e6   : > { %3747 = vsyncadd (%p4948_p1), %s860_s15, 4294966256  ;;  %s871_s17 = scalar_lea.vmem [#allocation25], %s4431_s12  ;;  %s4949_s25 = sld [smem:[#allocation38_spill]] }
 0x1ec   : > { %p2716_p0 = scmp.ne.s32.totalorder %s4949_s25, 0 }
 0x1ed   : > { %v969_v0 = vld [vmem:[#allocation2] sm:$0xff] (!%p2716_p0)  ;;  %vm971_vm0 = vcmask (!%p2716_p0), 261120   ;;  %v970_v1 = vld [vmem:[#allocation2 + $0x8] sm:$0xff] (!%p2716_p0) }
 0x1ee   : > { %968 = sbr.rel (%p2716_p0) target bundleno = 501 (0x1f5), region = 144  ;;  %972 = vst.msk [vmem:[#allocation26] sm:$0xff] (!%p2716_p0), %vm971_vm0, %v969_v0  ;;  %973 = vst.msk [vmem:[#allocation26 + $0x8] sm:$0xff] (!%p2716_p0), %vm971_vm0, %v970_v1 }
 0x1f5 PF: > { %v974_v2 = vld [vmem:[#allocation26] sm:$0xff]  ;;  %vm1006_vm1 = vcmask 261120   ;;  %v975_v3 = vld [vmem:[#allocation26 + $0x8] sm:$0xff]  ;;  %v3797_v17 = vmov 0.0   ;;  %vm3798_vm2 = vmmov 0   ;;  %s3799_s26 = smov 112  }
 0x1f6   : > { %v1007_v4 = vsel %vm1006_vm1, %v974_v2, 0.0  ;;  %v1010_v5 = vsel %vm1006_vm1, %v975_v3, 0.0  ;;  %v3166_v16 = vld [vmem:[%s796_s21] sm:$0xff]   ;;  %2818 = vmatprep.subr.bf16.mxu0 %v3797_v17  ;;  %2838 = vmatprep.subr.bf16.mxu1 %v3797_v17  ;;  %v3167_v18 = vld [vmem:[%s796_s21 + $0x8] sm:$0xff]   ;;  %s3800_s19 = smov 120   ;;  %v3803_v53 = vmov 0  }
 0x1f7   : > { %1008 = vadd.xlane.f32.xlu0 %v1007_v4  ;;  %2819 = vmatpush3.bf16.msra.mxu0 %v3166_v16  ;;  %v2745_v27 = vld [vmem:[%s829_s30] ss:$0 sm:$0xff]  ;;  %vm1149_vm3 = vcmask 64512   ;;  %s3804_s21 = smov 64   ;;  %vm1658_vm6 = vcmask 1043456   ;;  %s3806_s30 = smov 16  }
 0x1f8   : > { %2820 = vmatprep.subr.bf16.mxu0 %v3797_v17  ;;  %2822 = vmatprep.mubr.msk.bf16.mxu0 %vm3798_vm2, %v3797_v17  ;;  %v2719_v28 = vld [vmem:[%s779_s5] ss:$0 sm:$0xff]  ;;  %s3801_s5 = smov 104   ;;  %vm2064_vm7 = vcmask 130048   ;;  %vm2067_vm8 = vcmask 195584   ;;  %s4950_s10 = sld [smem:[#allocation40_spill]] }
 0x1f9   : > { %2840 = vmatprep.mubr.msk.bf16.mxu1 %vm3798_vm2, %v3797_v17  ;;  %v2720_v33 = vld [vmem:[%s787_s3] ss:$0 sm:$0xff]  ;;  %s3802_s3 = smov 96   ;;  %3149 = vset.pattern.permute.xlu1 %v3803_v53 }
 0x1fa   : > { %v2746_v34 = vld [vmem:[%s837_s24] ss:$0 sm:$0xff]  ;;  %3150 = vset.pattern.permute.xlu0 %v3803_v53  ;;  %s3807_s24 = smov 24  }
 0x1fb   : > { %1011 = vadd.xlane.f32.xlu0 %v1010_v5  ;;  %2821 = vmatpush3.bf16.msra.mxu0 %v3167_v18  ;;  %v2721_v43 = vld [vmem:[%s804_s14] ss:$0 sm:$0xff]  ;;  %s3805_s14 = smov 8  }
 0x1fc   : > { %2826 = vmatprep.subr.bf16.mxu0 %v3797_v17 }
 0x1fe   : > { %p3062_p5 = scmp.eq.s32.totalorder %s4950_s10, 1 }
 0x284   : > { %v1009_v6 = vpop.xlane.xlu0 %1008 }
 0x285   : > { %v1014_v7 = vmul.f32 0.03125, %v1009_v6 }
 0x287   : > { %v1016_v8 = vsub.f32 %v974_v2, %v1014_v7 }
 0x288   : > { %v1012_v9 = vpop.xlane.xlu0 %1011 }
 0x289   : > { %v1015_v10 = vmul.f32 0.03125, %v1012_v9  ;;  %v1018_v11 = vmul.f32 %v1016_v8, %v1016_v8  ;;  %v977_v9 = vld [vmem:[#allocation5 + $0x8] sm:$0xff] }
 0x28b   : > { %v1017_v12 = vsub.f32 %v975_v3, %v1015_v10  ;;  %v1020_v13 = vsel %vm1006_vm1, %v1018_v11, 0.0 }
 0x28c   : > { %1021 = vadd.xlane.f32.xlu1 %v1020_v13 }
 0x28d   : > { %v1019_v14 = vmul.f32 %v1017_v12, %v1017_v12 }
 0x28f   : > { %v1023_v15 = vsel %vm1006_vm1, %v1019_v14, 0.0 }
 0x290   : > { %1024 = vadd.xlane.f32.xlu1 %v1023_v15 }
 0x319   : > { %v1022_v19 = vpop.xlane.xlu1 %1021 }
 0x31a   : > { %v1026_v20 = vmul.f32 0.03125, %v1022_v19 }
 0x31c   : > { %v1028_v21 = vadd.f32 1e-05, %v1026_v20 }
 0x31d   : > { %v1025_v22 = vpop.xlane.xlu1 %1024 }
 0x31e   : > { %3180 = vrsqrt.f32 %v1028_v21  ;;  %v1027_v23 = vmul.f32 0.03125, %v1025_v22 }
 0x320   : > { %v1029_v24 = vadd.f32 1e-05, %v1027_v23 }
 0x322   : > { %3182 = vrsqrt.f32 %v1029_v24  ;;  %v2717_v24 = vld [vmem:[#allocation7] ss:$0 sm:$0xff] }
 0x328   : > { %v3181_v25 = vpop.eup %3180 }
 0x329   : > { %v1032_v26 = vmul.f32 %v3181_v25, %v1016_v8  ;;  %v976_v8 = vld [vmem:[#allocation5] sm:$0xff] }
 0x32b   : > { %v2146_v30 = vmul.f32 %v2745_v27, %v1032_v26  ;;  %v1040_v32 = vmul.f32 %v2719_v28, %v1032_v26 }
 0x32c   : > { %v3183_v29 = vpop.eup %3182 }
 0x32d   : > { %v1033_v31 = vmul.f32 %v3183_v29, %v1017_v12  ;;  %v1048_v37 = vadd.f32 %v2720_v33, %v1040_v32  ;;  %v4505_v39 = vadd.f32 %v2746_v34, %v2146_v30  ;;  %v2718_v30 = vld [vmem:[#allocation7 + $0x1] ss:$0 sm:$0xff] }
 0x32f   : > { %v2147_v35 = vmul.f32 %v2745_v27, %v1033_v31  ;;  %v1041_v36 = vmul.f32 %v2719_v28, %v1033_v31 }
 0x331   : > { %v1049_v38 = vadd.f32 %v2720_v33, %v1041_v36  ;;  %v4507_v40 = vadd.f32 %v2746_v34, %v2147_v35 }
 0x333   : > { %v1050_v41 = vpack.c.bf16 %v1049_v38, %v1048_v37  ;;  %v2156_v42 = vpack.c.bf16 %v4507_v40, %v4505_v39 }
 0x335   : > { %2823 = vmatmul.mubr.msk.bf16.vlgmr.msra.gmra.mrb[0].mxu0 %vm1006_vm1, %v1050_v41 }
 0x336   : > { %2828 = vmatprep.mubr.msk.bf16.mxu0 %vm3798_vm2, %v3797_v17 }
 0x408   : > { %v1111_v44 = vpop.f32.mrb[0].mxu0 }
 0x409   : > { %v2824_v45 = vpop.f32.mrb[1].mxu0  ;;  %v1112_v47 = vadd.f32 %v2721_v43, %v1111_v44 }
 0x40a   : > { %v1114_v46 = vpop.f32.mrb[2].mxu0 }
 0x40b   : > { %v1115_v48 = vadd.f32 %v2721_v43, %v1114_v46  ;;  %v2825_v49 = vpop.f32.mrb[3].mxu0  ;;  %v4520_v52 = vpack.c.bf16 %v1112_v47, %v1112_v47 }
 0x40d   : > { %v3139_v50 = vpack.i.bf16 %v1115_v48, %v1112_v47  ;;  %v4516_v51 = vpack.c.bf16 %v1115_v48, %v1115_v48 }
 0x40f   : > { %3140 = vrot.lane.b32.xlu1 %v3139_v50, %s3799_s26  ;;  %3135 = vrot.lane.b32.xlu0 %v3139_v50, %s3800_s19 }
 0x413   : > { %3145 = vrot.lane.b32.xlu1 %v3139_v50, %s3801_s5  ;;  %1197 = vrot.lane.b32.xlu0 %v4516_v51, %s3802_s3 }
 0x417   : > { %1147 = vrot.lane.b32.xlu1 %v4520_v52, %s3802_s3 }
 0x481   : > { %v3141_v54 = vpop.permute.xlu1 %3140  ;;  %v3136_v55 = vpop.permute.xlu0 %3135 }
 0x482   : > { %v3138_v56 = vunpack.i.h.bf16 %v3136_v55  ;;  %v3137_v57 = vunpack.i.l.bf16 %v3136_v55  ;;  %v3143_v58 = vunpack.i.h.bf16 %v3141_v54  ;;  %v3142_v59 = vunpack.i.l.bf16 %v3141_v54 }
 0x484   : > { %v4524_v60 = vpack.c.bf16 %v3138_v56, %v3138_v56  ;;  %v4526_v61 = vpack.c.bf16 %v3137_v57, %v3137_v57  ;;  %v4532_v63 = vpack.c.bf16 %v3143_v58, %v3143_v58  ;;  %v4534_v0 = vpack.c.bf16 %v3142_v59, %v3142_v59 }
 0x485   : > { %v3146_v62 = vpop.permute.xlu1 %3145  ;;  %v1198_v7 = vpop.permute.xlu0 %1197 }
 0x486   : > { %1246 = vrot.lane.b32.xlu1 %v4526_v61, %s3802_s3  ;;  %1295 = vrot.lane.b32.xlu0 %v4524_v60, %s3802_s3  ;;  %v3148_v1 = vunpack.i.h.bf16 %v3146_v62  ;;  %v3147_v2 = vunpack.i.l.bf16 %v3146_v62  ;;  %v1203_v10 = vsel %vm1149_vm3, %v1198_v7, 0 }
 0x488   : > { %v4541_v5 = vpack.c.bf16 %v3148_v1, %v3148_v1  ;;  %v4543_v6 = vpack.c.bf16 %v3147_v2, %v3147_v2 }
 0x489   : > { %v1148_v3 = vpop.permute.xlu1 %1147 }
 0x48a   : > { %v1154_v4 = vsel %vm1149_vm3, %v1148_v3, 0  ;;  %1344 = vrot.lane.b32.xlu1 %v4534_v0, %s3802_s3  ;;  %1393 = vrot.lane.b32.xlu0 %v4532_v63, %s3802_s3 }
 0x48b   : > { %2827 = vmatpush3.bf16.xpose.msra.mxu0 %v1154_v4 }
 0x48c   : > { %2832 = vmatprep.subr.bf16.mxu0 %v3797_v17 }
 0x48e   : > { %1442 = vrot.lane.b32.xlu1 %v4543_v6, %s3802_s3  ;;  %1491 = vrot.lane.b32.xlu0 %v4541_v5, %s3802_s3 }
 0x492   : > { %2829 = vmatmul.mubr.msk.bf16.vlgmr.msra.gmra.mrb[4].mxu0 %vm1149_vm3, %v4520_v52  ;;  %982 = vperm.xlu1 %3149, %v976_v8  }
 0x493   : > { %2833 = vmatpush3.bf16.xpose.msra.mxu0 %v1203_v10  ;;  %2834 = vmatprep.mubr.msk.bf16.mxu0 %vm3798_vm2, %v3797_v17 }
 0x494   : > { %987 = vperm.xlu0 %3150, %v977_v9   ;;  %2844 = vmatprep.subr.bf16.mxu0 %v3797_v17 }
 0x49a   : > { %2835 = vmatmul.mubr.msk.bf16.vlgmr.msra.gmra.mrb[8].mxu0 %vm1149_vm3, %v4516_v51 }
 0x49b   : > { %2846 = vmatprep.mubr.msk.bf16.mxu0 %vm3798_vm2, %v3797_v17 }
 0x4f8   : > { %v1247_v11 = vpop.permute.xlu1 %1246  ;;  %v1296_v12 = vpop.permute.xlu0 %1295 }
 0x4f9   : > { %v1301_v13 = vsel %vm1149_vm3, %v1296_v12, 0  ;;  %v1252_v14 = vsel %vm1149_vm3, %v1247_v11, 0 }
 0x4fa   : > { %2839 = vmatpush3.bf16.xpose.msra.mxu1 %v1252_v14  ;;  %2845 = vmatpush3.bf16.xpose.msra.mxu0 %v1301_v13 }
 0x4fb   : > { %2850 = vmatprep.subr.bf16.mxu1 %v3797_v17  ;;  %2856 = vmatprep.subr.bf16.mxu0 %v3797_v17 }
 0x4fc   : > { %v1345_v15 = vpop.permute.xlu1 %1344  ;;  %v1394_v16 = vpop.permute.xlu0 %1393 }
 0x4fd   : > { %v1350_v18 = vsel %vm1149_vm3, %v1345_v15, 0  ;;  %v1399_v19 = vsel %vm1149_vm3, %v1394_v16, 0 }
 0x500   : > { %v1443_v20 = vpop.permute.xlu1 %1442  ;;  %v1492_v21 = vpop.permute.xlu0 %1491 }
 0x501   : > { %2841 = vmatmul.mubr.msk.bf16.vlgmr.msra.gmra.mrb[0].mxu1 %vm1149_vm3, %v4526_v61  ;;  %2847 = vmatmul.mubr.msk.bf16.vlgmr.msra.gmra.mrb[12].mxu0 %vm1149_vm3, %v4524_v60  ;;  %v1448_v22 = vsel %vm1149_vm3, %v1443_v20, 0  ;;  %v1497_v23 = vsel %vm1149_vm3, %v1492_v21, 0 }
 0x502   : > { %2851 = vmatpush3.bf16.xpose.msra.mxu1 %v1350_v18  ;;  %2857 = vmatpush3.bf16.xpose.msra.mxu0 %v1399_v19 }
 0x503   : > { %2852 = vmatprep.mubr.msk.bf16.mxu1 %vm3798_vm2, %v3797_v17  ;;  %2858 = vmatprep.mubr.msk.bf16.mxu0 %vm3798_vm2, %v3797_v17 }
 0x504   : > { %2862 = vmatprep.subr.bf16.mxu1 %v3797_v17  ;;  %2868 = vmatprep.subr.bf16.mxu0 %v3797_v17 }
 0x509   : > { %2853 = vmatmul.mubr.msk.bf16.vlgmr.msra.gmra.mrb[4].mxu1 %vm1149_vm3, %v4534_v0  ;;  %2859 = vmatmul.mubr.msk.bf16.vlgmr.msra.gmra.mrb[16].mxu0 %vm1149_vm3, %v4532_v63 }
 0x50a   : > { %2863 = vmatpush3.bf16.xpose.msra.mxu1 %v1448_v22  ;;  %2869 = vmatpush3.bf16.xpose.msra.mxu0 %v1497_v23 }
 0x50b   : > { %2864 = vmatprep.mubr.msk.bf16.mxu1 %vm3798_vm2, %v3797_v17  ;;  %2870 = vmatprep.mubr.msk.bf16.mxu0 %vm3798_vm2, %v3797_v17 }
 0x50c   : > { %2880 = vmatprep.subr.bf16.mxu0 %v3797_v17  ;;  %2874 = vmatprep.subr.bf16.mxu1 %v3797_v17 }
 0x511   : > { %2865 = vmatmul.mubr.msk.bf16.vlgmr.msra.gmra.mrb[8].mxu1 %vm1149_vm3, %v4543_v6  ;;  %2871 = vmatmul.mubr.msk.bf16.vlgmr.msra.gmra.mrb[20].mxu0 %vm1149_vm3, %v4541_v5  ;;  %v983_v25 = vpop.permute.xlu1 %982 }
 0x512   : > { %2876 = vmatprep.mubr.msk.bf16.mxu1 %vm3798_vm2, %v3797_v17  ;;  %2882 = vmatprep.mubr.msk.bf16.mxu0 %vm3798_vm2, %v3797_v17  ;;  %v4596_v26 = vmul.f32 %v2717_v24, %v983_v25 }
 0x513   : > { %v988_v31 = vpop.permute.xlu0 %987 }
 0x514   : > { %vm1547_vm4 = vcmp.eq.f32.partialorder %v4596_v26, 0.0  ;;  %v4605_v36 = vmul.f32 %v2718_v30, %v988_v31 }
 0x516   : > { %vm1548_vm5 = vcmp.eq.f32.partialorder %v4605_v36, 0.0 }
 0x565   : > { %v1190_v27 = vpop.f32.mrb[4].mxu0 }
 0x566   : > { %v1539_v28 = vmul.f32 0.35355338, %v1190_v27  ;;  %v2830_v29 = vpop.f32.mrb[5].mxu0 }
 0x567   : > { %v1193_v32 = vpop.f32.mrb[6].mxu0 }
 0x568   : > { %v2831_v33 = vpop.f32.mrb[7].mxu0  ;;  %v4601_v34 = vsel %vm1547_vm4, -1e+09, %v1539_v28 }
 0x569   : > { %v1557_v35 = vsel %vm1149_vm3, %v4601_v34, -inf }
 0x56a   : > { %1558 = vmax.xlane.f32.xlu1 %v1557_v35 }
 0x56d   : > { %v1239_v37 = vpop.f32.mrb[8].mxu0 }
 0x56e   : > { %v1540_v38 = vmul.f32 0.35355338, %v1239_v37  ;;  %v2836_v41 = vpop.f32.mrb[9].mxu0 }
 0x56f   : > { %v1242_v43 = vpop.f32.mrb[10].mxu0 }
 0x570   : > { %v2837_v44 = vpop.f32.mrb[11].mxu0  ;;  %v4610_v45 = vsel %vm1548_vm5, -1e+09, %v1540_v38 }
 0x571   : > { %v1560_v46 = vsel %vm1149_vm3, %v4610_v45, -inf }
 0x572   : > { %1561 = vmax.xlane.f32.xlu0 %v1560_v46 }
 0x5d4   : > { %v1288_v47 = vpop.f32.mrb[0].mxu1  ;;  %v1337_v48 = vpop.f32.mrb[12].mxu0 }
 0x5d5   : > { %v1541_v49 = vmul.f32 0.35355338, %v1288_v47  ;;  %v1542_v50 = vmul.f32 0.35355338, %v1337_v48  ;;  %v2842_v53 = vpop.f32.mrb[1].mxu1  ;;  %v2848_v54 = vpop.f32.mrb[13].mxu0 }
 0x5d6   : > { %v1291_v55 = vpop.f32.mrb[2].mxu1  ;;  %v1340_v56 = vpop.f32.mrb[14].mxu0 }
 0x5d7   : > { %v2843_v57 = vpop.f32.mrb[3].mxu1  ;;  %v2849_v58 = vpop.f32.mrb[15].mxu0  ;;  %v1551_v59 = vsel %vm1547_vm4, -1e+09, %v1541_v49  ;;  %v4618_v62 = vsel %vm1548_vm5, -1e+09, %v1542_v50 }
 0x5d8   : > { %v1563_v1 = vsel %vm1149_vm3, %v1551_v59, -inf  ;;  %v1566_v2 = vsel %vm1149_vm3, %v4618_v62, -inf }
 0x5d9   : > { %1564 = vmax.xlane.f32.xlu0 %v1563_v1  ;;  %1567 = vmax.xlane.f32.xlu1 %v1566_v2 }
 0x5dc   : > { %v1386_v3 = vpop.f32.mrb[4].mxu1  ;;  %v1435_v4 = vpop.f32.mrb[16].mxu0 }
 0x5dd   : > { %v1543_v7 = vmul.f32 0.35355338, %v1386_v3  ;;  %v1544_v8 = vmul.f32 0.35355338, %v1435_v4  ;;  %v2854_v9 = vpop.f32.mrb[5].mxu1  ;;  %v2860_v10 = vpop.f32.mrb[17].mxu0 }
 0x5de   : > { %v1389_v11 = vpop.f32.mrb[6].mxu1  ;;  %v1438_v12 = vpop.f32.mrb[18].mxu0 }
 0x5df   : > { %v2855_v13 = vpop.f32.mrb[7].mxu1  ;;  %v2861_v14 = vpop.f32.mrb[19].mxu0  ;;  %v4625_v15 = vsel %vm1547_vm4, -1e+09, %v1543_v7  ;;  %v1554_v16 = vsel %vm1548_vm5, -1e+09, %v1544_v8 }
 0x5e0   : > { %v1569_v18 = vsel %vm1149_vm3, %v4625_v15, -inf  ;;  %v1572_v19 = vsel %vm1149_vm3, %v1554_v16, -inf }
 0x5e1   : > { %1570 = vmax.xlane.f32.xlu0 %v1569_v18  ;;  %1573 = vmax.xlane.f32.xlu1 %v1572_v19 }
 0x5e4   : > { %v1484_v20 = vpop.f32.mrb[8].mxu1  ;;  %v1533_v21 = vpop.f32.mrb[20].mxu0 }
 0x5e5   : > { %v1545_v22 = vmul.f32 0.35355338, %v1484_v20  ;;  %v2866_v23 = vpop.f32.mrb[9].mxu1  ;;  %v2872_v24 = vpop.f32.mrb[21].mxu0  ;;  %v1546_v35 = vmul.f32 0.35355338, %v1533_v21 }
 0x5e6   : > { %v1487_v25 = vpop.f32.mrb[10].mxu1  ;;  %v1536_v27 = vpop.f32.mrb[22].mxu0 }
 0x5e7   : > { %v2867_v28 = vpop.f32.mrb[11].mxu1  ;;  %v2873_v29 = vpop.f32.mrb[23].mxu0  ;;  %v4634_v30 = vsel %vm1547_vm4, -1e+09, %v1545_v22  ;;  %v1556_v37 = vsel %vm1548_vm5, -1e+09, %v1546_v35 }
 0x5e8   : > { %v1575_v31 = vsel %vm1149_vm3, %v4634_v30, -inf  ;;  %v1578_v38 = vsel %vm1149_vm3, %v1556_v37, -inf }
 0x5e9   : > { %1576 = vmax.xlane.f32.xlu0 %v1575_v31 }
 0x5f2   : > { %1702 = vrot.lane.b32.xlu1 %v4516_v51, %s3804_s21 }
 0x5f6   : > { %1750 = vrot.lane.b32.xlu1 %v4526_v61, %s3804_s21 }
 0x5f7   : > { %v1559_v32 = vpop.xlane.xlu1 %1558 }
 0x5f8   : > { %v1581_v33 = vsub.f32 %v4601_v34, %v1559_v32 }
 0x5fa   : > { %v1589_v26 = vmul.f32 1.442695, %v1581_v33 }
 0x5fc   : > { %3184 = vpow2.f32 %v1589_v26 }
 0x5ff   : > { %1653 = vrot.lane.b32.xlu0 %v4520_v52, %s3804_s21  ;;  %v1562_v52 = vpop.xlane.xlu0 %1561 }
 0x600   : > { %v1582_v61 = vsub.f32 %v4610_v45, %v1562_v52 }
 0x602   : > { %v1591_v34 = vmul.f32 1.442695, %v1582_v61 }
 0x604   : > { %3186 = vpow2.f32 %v1591_v34 }
 0x606   : > { %v4648_v41 = vpop.eup %3184 }
 0x607   : > { %v1605_v51 = vsel %vm1149_vm3, %v4648_v41, 0.0 }
 0x60e   : > { %v4655_v43 = vpop.eup %3186 }
 0x60f   : > { %v1608_v36 = vsel %vm1149_vm3, %v4655_v43, 0.0 }
 0x61a   : > { %1579 = vmax.xlane.f32.xlu1 %v1578_v38 }
 0x61e   : > { %1606 = vadd.xlane.f32.xlu0 %v1605_v51 }
 0x62b   : > { %1798 = vrot.lane.b32.xlu1 %v4524_v60, %s3804_s21 }
 0x64f   : > { %1609 = vadd.xlane.f32.xlu1 %v1608_v36 }
 0x660   : > { %1894 = vrot.lane.b32.xlu1 %v4532_v63, %s3804_s21 }
 0x666   : > { %v1565_v44 = vpop.xlane.xlu0 %1564  ;;  %v1568_v48 = vpop.xlane.xlu1 %1567 }
 0x667   : > { %v1583_v46 = vsub.f32 %v1551_v59, %v1565_v44  ;;  %v1584_v60 = vsub.f32 %v4618_v62, %v1568_v48 }
 0x669   : > { %v1593_v47 = vmul.f32 1.442695, %v1583_v46  ;;  %v1595_v45 = vmul.f32 1.442695, %v1584_v60 }
 0x66b   : > { %3188 = vpow2.f32 %v1593_v47 }
 0x66c   : > { %3190 = vpow2.f32 %v1595_v45 }
 0x66e   : > { %v1574_v49 = vpop.xlane.xlu1 %1573  ;;  %v1571_v50 = vpop.xlane.xlu0 %1570 }
 0x66f   : > { %v1586_v53 = vsub.f32 %v1554_v16, %v1574_v49  ;;  %v1585_v7 = vsub.f32 %v4625_v15, %v1571_v50 }
 0x671   : > { %v1599_v63 = vmul.f32 1.442695, %v1586_v53  ;;  %v1597_v8 = vmul.f32 1.442695, %v1585_v7 }
 0x672   : > { %v1703_v54 = vpop.permute.xlu1 %1702 }
 0x673   : > { %v1708_v55 = vsel %vm1658_vm6, %v1703_v54, 0  ;;  %3192 = vpow2.f32 %v1599_v63 }
 0x674   : > { %2881 = vmatpush3.bf16.msra.mxu0 %v1708_v55  ;;  %3194 = vpow2.f32 %v1597_v8 }
 0x675   : > { %v4663_v56 = vpop.eup %3188  ;;  %2892 = vmatprep.subr.bf16.mxu0 %v3797_v17 }
 0x676   : > { %v1577_v57 = vpop.xlane.xlu0 %1576  ;;  %v1611_v58 = vsel %vm1149_vm3, %v4663_v56, 0.0  ;;  %v4670_v1 = vpop.eup %3190 }
 0x677   : > { %1612 = vadd.xlane.f32.xlu0 %v1611_v58  ;;  %v1614_v2 = vsel %vm1149_vm3, %v4670_v1, 0.0  ;;  %v1587_v9 = vsub.f32 %v4634_v30, %v1577_v57  ;;  %v1751_v11 = vpop.permute.xlu1 %1750 }
 0x678   : > { %v1756_v25 = vsel %vm1658_vm6, %v1751_v11, 0 }
 0x679   : > { %v1601_v10 = vmul.f32 1.442695, %v1587_v9 }
 0x67a   : > { %v1654_v59 = vpop.permute.xlu0 %1653 }
 0x67b   : > { %v1660_v62 = vsel %vm1658_vm6, %v1654_v59, 0  ;;  %3196 = vpow2.f32 %v1601_v10 }
 0x67c   : > { %2875 = vmatpush3.bf16.msra.mxu1 %v1660_v62 }
 0x67d   : > { %2886 = vmatprep.subr.bf16.mxu1 %v3797_v17  ;;  %v4674_v3 = vpop.eup %3192 }
 0x67e   : > { %v1620_v4 = vsel %vm1149_vm3, %v4674_v3, 0.0  ;;  %v4682_v13 = vpop.eup %3194 }
 0x67f   : > { %v1617_v19 = vsel %vm1149_vm3, %v4682_v13, 0.0 }
 0x684   : > { %1615 = vadd.xlane.f32.xlu1 %v1614_v2 }
 0x685   : > { %v4686_v20 = vpop.eup %3196 }
 0x688   : > { %1621 = vadd.xlane.f32.xlu1 %v1620_v4 }
 0x68d   : > { %1846 = vrot.lane.b32.xlu0 %v4534_v0, %s3804_s21  ;;  %v1623_v0 = vsel %vm1149_vm3, %v4686_v20, 0.0 }
 0x6a7   : > { %v1580_v12 = vpop.xlane.xlu1 %1579 }
 0x6a8   : > { %v1588_v14 = vsub.f32 %v1556_v37, %v1580_v12 }
 0x6aa   : > { %v1603_v16 = vmul.f32 1.442695, %v1588_v14 }
 0x6ab   : > { %v1607_v18 = vpop.xlane.xlu0 %1606  ;;  %v1799_v27 = vpop.permute.xlu1 %1798 }
 0x6ac   : > { %3198 = vpow2.f32 %v1603_v16  ;;  %1618 = vadd.xlane.f32.xlu0 %v1617_v19  ;;  %v1804_v32 = vsel %vm1658_vm6, %v1799_v27, 0 }
 0x6ad   : > { %3200 = vrcp.f32 %v1607_v18 }
 0x6b0   : > { %1624 = vadd.xlane.f32.xlu0 %v1623_v0 }
 0x6b6   : > { %v4690_v15 = vpop.eup %3198 }
 0x6b7   : > { %v3201_v21 = vpop.eup %3200  ;;  %v1626_v22 = vsel %vm1149_vm3, %v4690_v15, 0.0 }
 0x6b8   : > { %v1637_v23 = vmul.f32 %v3201_v21, %v4648_v41  ;;  %1627 = vadd.xlane.f32.xlu1 %v1626_v22 }
 0x6ba   : > { %v1645_v24 = vpack.c.bf16 %v1637_v23, %v1637_v23 }
 0x6bc   : > { %2877 = vmatmul.mubr.msk.bf16.vlgmr.msra.gmra.mrb[12].mxu1 %vm1149_vm3, %v1645_v24  ;;  %v3170_v24 = vld [vmem:[%s813_s9] sm:$0xff]  }
 0x6bd   : > { %2887 = vmatpush3.bf16.msra.mxu1 %v1756_v25  ;;  %2888 = vmatprep.mubr.msk.bf16.mxu1 %vm3798_vm2, %v3797_v17 }
 0x6be   : > { %2898 = vmatprep.subr.bf16.mxu1 %v3797_v17 }
 0x6c6   : > { %1942 = vrot.lane.b32.xlu0 %v4543_v6, %s3804_s21 }
 0x6c9   : > { %1990 = vrot.lane.b32.xlu1 %v4541_v5, %s3804_s21 }
 0x6dc   : > { %v1610_v28 = vpop.xlane.xlu1 %1609 }
 0x6dd   : > { %3202 = vrcp.f32 %v1610_v28 }
 0x6e0   : > { %v1895_v5 = vpop.permute.xlu1 %1894 }
 0x6e1   : > { %v1900_v36 = vsel %vm1658_vm6, %v1895_v5, 0 }
 0x6e7   : > { %v3203_v29 = vpop.eup %3202 }
 0x6e8   : > { %v1638_v30 = vmul.f32 %v3203_v29, %v4655_v43 }
 0x6ea   : > { %v1646_v31 = vpack.c.bf16 %v1638_v30, %v1638_v30 }
 0x6ec   : > { %2883 = vmatmul.mubr.msk.bf16.vlgmr.msra.gmra.mrb[24].mxu0 %vm1149_vm3, %v1646_v31  ;;  %v3171_v31 = vld [vmem:[%s813_s9 + $0x8] sm:$0xff]   ;;  %s3808_s9 = smov [#allocation26]  }
 0x6ed   : > { %2893 = vmatpush3.bf16.msra.mxu0 %v1804_v32  ;;  %2894 = vmatprep.mubr.msk.bf16.mxu0 %vm3798_vm2, %v3797_v17  ;;  %s2370_s23 = sshll.u32 %s3808_s9, 4  ;;  %s2371_s23 = int_to_ptr.vmem [resolvable:$true] %s2370_s23 }
 0x6ee   : > { %2904 = vmatprep.subr.bf16.mxu0 %v3797_v17  ;;  %s3666_s12 = scalar_lea.vmem %s2371_s23, 256  ;;  %p3673_p6 = scmp.lt.s32.totalorder %s2371_s23, %s2371_s23 }
 0x6ef   : > { %p3667_p10 = scmp.ne.s32.totalorder %s2371_s23, %s3666_s12  ;;  %p3674_p4 = scmp.lt.s32.totalorder %s3666_s12, %s3666_s12 }
 0x6f1   : > { %p3668_p3 = pnand %p3667_p10, %p3062_p5  ;;  %p3675_p11 = por %p3674_p4, %p3673_p6 }
 0x6f3   : > { %p3669_p13 = pneg %p3668_p3 }
 0x6f5   : > { %p3676_p7 = pnand %p3675_p11, %p3669_p13 }
 0x704   : > { %v1613_v6 = vpop.xlane.xlu0 %1612 }
 0x705   : > { %3204 = vrcp.f32 %v1613_v6 }
 0x708   : > { %v1847_v35 = vpop.permute.xlu0 %1846 }
 0x709   : > { %v1852_v41 = vsel %vm1658_vm6, %v1847_v35, 0 }
 0x70f   : > { %v3205_v33 = vpop.eup %3204 }
 0x710   : > { %v1639_v26 = vmul.f32 %v3205_v33, %v4663_v56 }
 0x711   : > { %v1616_v37 = vpop.xlane.xlu1 %1615 }
 0x712   : > { %3206 = vrcp.f32 %v1616_v37  ;;  %v1647_v38 = vpack.c.bf16 %v1639_v26, %v1639_v26 }
 0x714   : > { %2889 = vmatmul.mubr.msk.bf16.vlgmr.msra.gmra.mrb[16].mxu1 %vm1149_vm3, %v1647_v38 }
 0x715   : > { %2899 = vmatpush3.bf16.msra.mxu1 %v1852_v41  ;;  %v1622_v51 = vpop.xlane.xlu1 %1621  ;;  %2900 = vmatprep.mubr.msk.bf16.mxu1 %vm3798_vm2, %v3797_v17 }
 0x716   : > { %3208 = vrcp.f32 %v1622_v51  ;;  %2910 = vmatprep.subr.bf16.mxu1 %v3797_v17  ;;  %v2747_v51 = vld [vmem:[%s854_s29] ss:$0 sm:$0xff] }
 0x71c   : > { %v3207_v52 = vpop.eup %3206 }
 0x71d   : > { %v1640_v61 = vmul.f32 %v3207_v52, %v4670_v1  ;;  %v3168_v1 = vld [vmem:[%s846_s16] sm:$0xff]  }
 0x71f   : > { %v1648_v34 = vpack.c.bf16 %v1640_v61, %v1640_v61 }
 0x720   : > { %v3209_v43 = vpop.eup %3208 }
 0x721   : > { %2895 = vmatmul.mubr.msk.bf16.vlgmr.msra.gmra.mrb[28].mxu0 %vm1149_vm3, %v1648_v34  ;;  %v1642_v44 = vmul.f32 %v3209_v43, %v4674_v3  ;;  %v3169_v3 = vld [vmem:[%s846_s16 + $0x8] sm:$0xff]  }
 0x722   : > { %2905 = vmatpush3.bf16.msra.mxu0 %v1900_v36  ;;  %2906 = vmatprep.mubr.msk.bf16.mxu0 %vm3798_vm2, %v3797_v17 }
 0x723   : > { %2916 = vmatprep.subr.bf16.mxu0 %v3797_v17  ;;  %v1650_v46 = vpack.c.bf16 %v1642_v44, %v1642_v44 }
 0x729   : > { %2907 = vmatmul.mubr.msk.bf16.vlgmr.msra.gmra.mrb[32].mxu0 %vm1149_vm3, %v1650_v46 }
 0x72a   : > { %2918 = vmatprep.mubr.msk.bf16.mxu0 %vm3798_vm2, %v3797_v17 }
 0x739   : > { %v1619_v47 = vpop.xlane.xlu0 %1618 }
 0x73a   : > { %3210 = vrcp.f32 %v1619_v47 }
 0x73d   : > { %v1625_v48 = vpop.xlane.xlu0 %1624 }
 0x73e   : > { %3212 = vrcp.f32 %v1625_v48 }
 0x741   : > { %v1943_v50 = vpop.permute.xlu0 %1942 }
 0x742   : > { %v1948_v55 = vsel %vm1658_vm6, %v1943_v50, 0 }
 0x744   : > { %v3211_v60 = vpop.eup %3210 }
 0x745   : > { %v1641_v49 = vmul.f32 %v3211_v60, %v4682_v13  ;;  %v1628_v45 = vpop.xlane.xlu1 %1627 }
 0x746   : > { %3214 = vrcp.f32 %v1628_v45 }
 0x747   : > { %v1649_v53 = vpack.c.bf16 %v1641_v49, %v1641_v49 }
 0x748   : > { %v3213_v54 = vpop.eup %3212 }
 0x749   : > { %2901 = vmatmul.mubr.msk.bf16.vlgmr.msra.gmra.mrb[20].mxu1 %vm1149_vm3, %v1649_v53  ;;  %v1991_v56 = vpop.permute.xlu1 %1990  ;;  %v1643_v57 = vmul.f32 %v3213_v54, %v4686_v20 }
 0x74a   : > { %2911 = vmatpush3.bf16.msra.mxu1 %v1948_v55  ;;  %v1996_v63 = vsel %vm1658_vm6, %v1991_v56, 0  ;;  %2912 = vmatprep.mubr.msk.bf16.mxu1 %vm3798_vm2, %v3797_v17 }
 0x74b   : > { %2917 = vmatpush3.bf16.msra.mxu0 %v1996_v63  ;;  %2922 = vmatprep.subr.bf16.mxu1 %v3797_v17  ;;  %v1651_v58 = vpack.c.bf16 %v1643_v57, %v1643_v57 }
 0x74c   : > { %2930 = vmatprep.subr.bf16.mxu0 %v3797_v17 }
 0x750   : > { %v3215_v59 = vpop.eup %3214 }
 0x751   : > { %v1644_v62 = vmul.f32 %v3215_v59, %v4690_v15  ;;  %2913 = vmatmul.mubr.msk.bf16.vlgmr.msra.gmra.mrb[24].mxu1 %vm1149_vm3, %v1651_v58 }
 0x752   : > { %2926 = vmatprep.mubr.msk.bf16.mxu1 %vm3798_vm2, %v3797_v17  ;;  %2923 = vmatpush3.bf16.msra.mxu1 %v3170_v24  ;;  %v3177_v24 = vld [vmem:[%s4473_s7 + $0x28] sm:$0xff]  }
 0x753   : > { %v1652_v2 = vpack.c.bf16 %v1644_v62, %v1644_v62  ;;  %2924 = vmatprep.subr.bf16.mxu1 %v3797_v17 }
 0x755   : > { %2919 = vmatmul.mubr.msk.bf16.vlgmr.msra.gmra.mrb[36].mxu0 %vm1149_vm3, %v1652_v2 }
 0x756   : > { %2931 = vmatpush3.bf16.msra.mxu0 %v3168_v1  ;;  %2934 = vmatprep.mubr.msk.bf16.mxu0 %vm3798_vm2, %v3797_v17 }
 0x757   : > { %2932 = vmatprep.subr.bf16.mxu0 %v3797_v17  ;;  %2925 = vmatpush3.bf16.msra.mxu1 %v3171_v31  ;;  %v2751_v31 = vld [vmem:[%s871_s17] ss:$0 sm:$0xff] }
 0x758   : > { %2938 = vmatprep.subr.bf16.mxu1 %v3797_v17 }
 0x75a   : > { %2933 = vmatpush3.bf16.msra.mxu0 %v3169_v3 }
 0x75d   : > { %2935 = vmatmul.mubr.msk.bf16.vlgmr.msra.gmra.mrb[40].mxu0 %vm1006_vm1, %v2156_v42 }
 0x78f   : > { %v4751_v4 = vpop.f32.mrb[12].mxu1 }
 0x790   : > { %v2878_v7 = vpop.f32.mrb[13].mxu1 }
 0x791   : > { %v1699_v8 = vpop.f32.mrb[14].mxu1 }
 0x792   : > { %v2879_v9 = vpop.f32.mrb[15].mxu1 }
 0x7bf   : > { %v4753_v10 = vpop.f32.mrb[24].mxu0 }
 0x7c0   : > { %v2884_v11 = vpop.f32.mrb[25].mxu0 }
 0x7c1   : > { %v1747_v12 = vpop.f32.mrb[26].mxu0 }
 0x7c2   : > { %v2885_v13 = vpop.f32.mrb[27].mxu0 }
 0x7e7   : > { %v1792_v14 = vpop.f32.mrb[16].mxu1 }
 0x7e8   : > { %v2890_v16 = vpop.f32.mrb[17].mxu1 }
 0x7e9   : > { %v1795_v18 = vpop.f32.mrb[18].mxu1 }
 0x7ea   : > { %v2891_v19 = vpop.f32.mrb[19].mxu1 }
 0x7f4   : > { %v1840_v20 = vpop.f32.mrb[28].mxu0 }
 0x7f5   : > { %v3151_v0 = vpack.i.bf16 %v1840_v20, %v1792_v14  ;;  %v2896_v39 = vpop.f32.mrb[29].mxu0 }
 0x7f6   : > { %v1843_v40 = vpop.f32.mrb[30].mxu0 }
 0x7f7   : > { %3152 = vrot.lane.b32.xlu0 %v3151_v0, %s3805_s14  ;;  %v2897_v42 = vpop.f32.mrb[31].mxu0 }
 0x7fc   : > { %v1936_v15 = vpop.f32.mrb[32].mxu0 }
 0x7fd   : > { %v2908_v21 = vpop.f32.mrb[33].mxu0 }
 0x7fe   : > { %v1939_v22 = vpop.f32.mrb[34].mxu0 }
 0x7ff   : > { %v2909_v23 = vpop.f32.mrb[35].mxu0  ;;  %v3173_v22 = vld [vmem:[%s4473_s7 + $0x8] sm:$0xff]  }
 0x800   : > { %v3176_v23 = vld [vmem:[%s4473_s7 + $0x20] sm:$0xff]  }
 0x81c   : > { %v1888_v25 = vpop.f32.mrb[20].mxu1 }
 0x81d   : > { %v3156_v27 = vpack.i.bf16 %v1936_v15, %v1888_v25  ;;  %v2902_v28 = vpop.f32.mrb[21].mxu1  ;;  %v3172_v15 = vld [vmem:[%s4473_s7] sm:$0xff]   ;;  %v3178_v25 = vld [vmem:[%s4473_s7 + $0x30] sm:$0xff]  }
 0x81e   : > { %v1891_v29 = vpop.f32.mrb[22].mxu1  ;;  %v2741_v28 = vld [vmem:[%s821_s18] ss:$0 sm:$0xff] }
 0x81f   : > { %v2903_v30 = vpop.f32.mrb[23].mxu1  ;;  %3157 = vrot.lane.b32.xlu1 %v3156_v27, %s3806_s30  ;;  %v3179_v27 = vld [vmem:[%s4473_s7 + $0x38] sm:$0xff]   ;;  %v3220_v29 = vld [vmem:[#allocation26] sm:$0xff] }
 0x820   : > { %v2958_v30 = vadd.f32 %v3220_v29, %v2741_v28 }
 0x824   : > { %v1984_v32 = vpop.f32.mrb[24].mxu1 }
 0x825   : > { %v2914_v6 = vpop.f32.mrb[25].mxu1 }
 0x826   : > { %v1987_v5 = vpop.f32.mrb[26].mxu1 }
 0x827   : > { %v2915_v33 = vpop.f32.mrb[27].mxu1  ;;  %v2959_v5 = vadd.f32 %v2958_v30, %v2751_v31 }
 0x828   : > { %v2032_v26 = vpop.f32.mrb[36].mxu0 }
 0x829   : > { %v3161_v35 = vpack.i.bf16 %v2032_v26, %v1984_v32  ;;  %v2920_v37 = vpop.f32.mrb[37].mxu0  ;;  %v3221_v32 = vld [vmem:[#allocation26 + $0x8] sm:$0xff] }
 0x82a   : > { %v2035_v38 = vpop.f32.mrb[38].mxu0  ;;  %v2961_v6 = vadd.f32 %v3221_v32, %v2741_v28 }
 0x82b   : > { %3162 = vrot.lane.b32.xlu0 %v3161_v35, %s3807_s24  ;;  %v2921_v41 = vpop.f32.mrb[39].mxu0 }
 0x82c   : > { %v2962_v33 = vadd.f32 %v2961_v6, %v2751_v31 }
 0x830   : > { %v2217_v52 = vpop.f32.mrb[40].mxu0 }
 0x831   : > { %v2218_v61 = vadd.f32 %v2747_v51, %v2217_v52  ;;  %v2936_v34 = vpop.f32.mrb[41].mxu0 }
 0x832   : > { %v2220_v43 = vpop.f32.mrb[42].mxu0 }
 0x833   : > { %v2226_v36 = vmul.f32 %v2218_v61, %v2218_v61  ;;  %v2221_v44 = vadd.f32 %v2747_v51, %v2220_v43  ;;  %v2937_v46 = vpop.f32.mrb[43].mxu0  ;;  %v2224_v58 = vmul.f32 0.5, %v2218_v61 }
 0x835   : > { %v2228_v47 = vmul.f32 %v2226_v36, %v2218_v61  ;;  %v2227_v48 = vmul.f32 %v2221_v44, %v2221_v44  ;;  %v2225_v59 = vmul.f32 0.5, %v2221_v44 }
 0x837   : > { %v2230_v60 = vmul.f32 0.044715, %v2228_v47  ;;  %v2229_v49 = vmul.f32 %v2227_v48, %v2221_v44 }
 0x839   : > { %v2232_v45 = vadd.f32 %v2230_v60, %v2218_v61  ;;  %v2231_v50 = vmul.f32 0.044715, %v2229_v49 }
 0x83b   : > { %v2234_v53 = vmul.f32 0.7978846, %v2232_v45  ;;  %v2233_v54 = vadd.f32 %v2231_v50, %v2221_v44 }
 0x83d   : > { %3216 = vtanh.f32 %v2234_v53  ;;  %v2235_v55 = vmul.f32 0.7978846, %v2233_v54 }
 0x83f   : > { %3218 = vtanh.f32 %v2235_v55 }
 0x847   : > { %v3217_v56 = vpop.eup %3216 }
 0x848   : > { %v2238_v63 = vadd.f32 1.0, %v3217_v56 }
 0x849   : > { %v3219_v57 = vpop.eup %3218 }
 0x84a   : > { %v2239_v62 = vadd.f32 1.0, %v3219_v57  ;;  %v2240_v1 = vmul.f32 %v2238_v63, %v2224_v58 }
 0x84c   : > { %v2241_v2 = vmul.f32 %v2239_v62, %v2225_v59 }
 0x84e   : > { %v2242_v3 = vpack.c.bf16 %v2241_v2, %v2240_v1 }
 0x869   : > { %v3153_v7 = vpop.permute.xlu0 %3152 }
 0x86a   : > { %v3155_v9 = vunpack.i.h.bf16 %v3153_v7  ;;  %v3154_v11 = vunpack.i.l.bf16 %v3153_v7 }
 0x86c   : > { %v2063_v16 = vsel %vm1149_vm3, %v4753_v10, %v3155_v9  ;;  %v2062_v18 = vsel %vm1149_vm3, %v4751_v4, %v3154_v11  ;;  %v3174_v4 = vld [vmem:[%s4473_s7 + $0x10] sm:$0xff]   ;;  %v3175_v10 = vld [vmem:[%s4473_s7 + $0x18] sm:$0xff]  }
 0x891   : > { %v3158_v8 = vpop.permute.xlu1 %3157 }
 0x892   : > { %v3160_v12 = vunpack.i.h.bf16 %v3158_v8  ;;  %v3159_v13 = vunpack.i.l.bf16 %v3158_v8 }
 0x894   : > { %v2066_v0 = vsel %vm2064_vm7, %v2063_v16, %v3160_v12  ;;  %v2065_v39 = vsel %vm2064_vm7, %v2062_v18, %v3159_v13 }
 0x89d   : > { %v3163_v14 = vpop.permute.xlu0 %3162 }
 0x89e   : > { %v3165_v19 = vunpack.i.h.bf16 %v3163_v14  ;;  %v3164_v20 = vunpack.i.l.bf16 %v3163_v14 }
 0x8a0   : > { %v2069_v40 = vsel %vm2067_vm8, %v2066_v0, %v3165_v19  ;;  %v2068_v42 = vsel %vm2067_vm8, %v2065_v39, %v3164_v20 }
 0x8a1   : > { %v2070_v21 = vpack.c.bf16 %v2069_v40, %v2068_v42 }
 0x8a3   : > { %2927 = vmatmul.mubr.msk.bf16.vlgmr.msra.gmra.mrb[28].mxu1 %vm1006_vm1, %v2070_v21 }
 0x8a4   : > { %2939 = vmatpush3.bf16.msra.mxu1 %v3172_v15  ;;  %2954 = vmatprep.mubr.msk.bf16.mxu1 %vm3798_vm2, %v3797_v17 }
 0x8a5   : > { %2940 = vmatprep.subr.bf16.mxu1 %v3797_v17 }
 0x8a8   : > { %2941 = vmatpush3.bf16.msra.mxu1 %v3173_v22 }
 0x8a9   : > { %2942 = vmatprep.subr.bf16.mxu1 %v3797_v17 }
 0x8ac   : > { %2943 = vmatpush3.bf16.msra.mxu1 %v3174_v4 }
 0x8ad   : > { %2944 = vmatprep.subr.bf16.mxu1 %v3797_v17 }
 0x8b0   : > { %2945 = vmatpush3.bf16.msra.mxu1 %v3175_v10 }
 0x8b1   : > { %2946 = vmatprep.subr.bf16.mxu1 %v3797_v17 }
 0x8b4   : > { %2947 = vmatpush3.bf16.msra.mxu1 %v3176_v23 }
 0x8b5   : > { %2948 = vmatprep.subr.bf16.mxu1 %v3797_v17 }
 0x8b8   : > { %2949 = vmatpush3.bf16.msra.mxu1 %v3177_v24 }
 0x8b9   : > { %2950 = vmatprep.subr.bf16.mxu1 %v3797_v17 }
 0x8bc   : > { %2951 = vmatpush3.bf16.msra.mxu1 %v3178_v25 }
 0x8bd   : > { %2952 = vmatprep.subr.bf16.mxu1 %v3797_v17 }
 0x8c0   : > { %2953 = vmatpush3.bf16.msra.mxu1 %v3179_v27 }
 0x8c3   : > { %2955 = vmatmul.mubr.bf16.vlgmr.msra.gmra.mrb[28].mxu1 %v2242_v3 }
 0x996   : > { %v2348_v26 = vpop.f32.mrb[28].mxu1 }
 0x997   : > { %v2960_v35 = vadd.f32 %v2959_v5, %v2348_v26  ;;  %v2956_v37 = vpop.f32.mrb[29].mxu1 }
 0x998   : > { %v2351_v17 = vpop.f32.mrb[30].mxu1 }
 0x999   : > { %2359 = vst.msk [vmem:[#allocation26] sm:$0xff] %vm1006_vm1, %v2960_v35  ;;  %v2963_v38 = vadd.f32 %v2962_v33, %v2351_v17  ;;  %v2957_v41 = vpop.f32.mrb[31].mxu1 }
 0x99b   : > { %2360 = vst.msk [vmem:[#allocation26 + $0x8] sm:$0xff] %vm1006_vm1, %v2963_v38 }
 0x99c   : > { %3679 = shalt.err (!%p3676_p7)
}
 0x99d   : > { %s4951_s20 = sld [smem:[#allocation53_spill]] }
 0x9a3   : > { %s4952_s29 = smov %s4951_s20  ;;  %s3680_s15 = scalar_lea.hbm %s4951_s20, 256 }
 0x9a4   : > { %p3681_p8 = scmp.ne.s32.totalorder %s4952_s29, %s3680_s15  ;;  %p3686_p12 = scmp.lt.u32.totalorder %s3680_s15, %s4952_s29 }
 0x9a6   : > { %p3682_p2 = pnand %p3681_p8, %p3062_p5 }
 0x9a8   : > { %p3683_p9 = pneg %p3682_p2 }
 0x9aa   : > { %p3688_p1 = pnand %p3686_p12, %p3683_p9 }
 0x9ac   : > { %3691 = shalt.err (!%p3688_p1)
}
 0x9ad   : > { %s3809_s19 = smov 128  }
 0x9ae   : > { %3005 = dma.vmem_to_hbm [thread:$0]  (%p3062_p5), %s2371_s23, 256, %s4952_s29, [#allocation4], %s3809_s19, %s3809_s19, %s3805_s14  }
 0x9af   : > { %3749 = dma.done.wait (%p3062_p5), [#allocation4], 256  }
 0x9b0   : > { %3751 = vsyncadd (%p3062_p5), [#allocation4], 4294967040 }
 0x9b1 PF: > { %s4953_s21 = sld [smem:[#allocation39_spill]]  ;;  %s4954_s18 = sld [smem:[#allocation36_spill]] }
 0x9b2   : > { %s4955_s19 = sld [smem:[#allocation37_spill]]  ;;  %s4956_s20 = sld [smem:[#allocation43_spill]] }
 0x9b3   : > { %s4957_s30 = sld [smem:[#allocation41_spill]] }
 0x9b7   : > { %s46_s23 = sadd.s32 1, %s4953_s21   ;;  %s4958_s21 = smov %s3770_s22 }
 0x9b8   : > { %p43_p0 = scmp.ge.s32.totalorder %s46_s23, 4  }
 0x9b9   : > { %s4959_s22 = smov %s4957_s30 }
 0x9ba   :  { %45 = sbr.rel (!%p43_p0) target bundleno = 27 (0x1b), region = 269 }
 0x9c1   :  { %2386 = vsyncpa [#allocation3], 1 }
 0x9c2   :  { %2388 = vsyncpa [#allocation3 + $0x1], 1 }
 0x9c3   :  { %2389 = vsyncpa [#allocation6], 1 }
 0x9c4   :  { %2390 = vsyncpa [#allocation9], 1 }
 0x9c5   :  { %2392 = vsyncpa [#allocation9 + $0x1], 1 }
 0x9c6   :  { %2393 = vsyncpa [#allocation12], 1 }
 0x9c7   :  { %2395 = vsyncpa [#allocation12 + $0x1], 1 }
 0x9c8   :  { %2396 = vsyncpa [#allocation15], 1 }
 0x9c9   :  { %2398 = vsyncpa [#allocation15 + $0x1], 1 }
 0x9ca   :  { %2399 = vsyncpa [#allocation18], 1 }
 0x9cb   :  { %2401 = vsyncpa [#allocation18 + $0x1], 1 }
 0x9cc   :  { %2402 = vsyncpa [#allocation21], 1 }
 0x9cd   :  { %2404 = vsyncpa [#allocation21 + $0x1], 1 }
 0x9ce   :  { %2405 = vsyncpa [#allocation24], 1 }
 0x9cf   :  { %2407 = vsyncpa [#allocation24 + $0x1], 1 }
 0x9d0   :  { %2408 = vsyncpa [#allocation4], 1 }
 0x9d1   :  { %2410 = vsyncpa [#allocation4 + $0x1], 1 }

</bundles_post_ra>
